<compile_context>
chip_gen: v6e
topology: v6e:2x2x1
jax: 0.10.0
libtpu: 0.0.40
codegen_flags: <defaults>
</compile_context>

<pallas_src>
import jax
import jax.numpy as jnp
from jax.experimental import pallas as pl
from jax.experimental.pallas import tpu as pltpu


def _decoder_kernel(x_ref, wih_ref, whh_ref, b_ref,
                    z_ref, h_out_ref,
                    h_sc, c_sc):
    """One grid step = one (batch-chunk, time-chunk).  Recurrence carried in VMEM scratch."""
    c_idx = pl.program_id(1)                     # time-chunk index (innermost axis)
    Bc, Tc, H = x_ref.shape

    @pl.when(c_idx == 0)
    def _():
        h_sc[...] = jnp.zeros_like(h_sc)
        c_sc[...] = jnp.zeros_like(c_sc)

    # ---- Input projection for the whole chunk: one large MXU matmul ----
    # (Bc, Tc, H) -> (Bc*Tc, H): leading-dim merge, layout-compatible since
    # Tc is a multiple of 8 (or the full T).
    x_chunk = x_ref[...].reshape(Bc * Tc, H)
    gx = (jnp.dot(x_chunk, wih_ref[...], preferred_element_type=jnp.float32)
          + b_ref[...])                          # bias folded in once per chunk
    gx = gx.reshape(Bc, Tc, 4 * H)

    h = h_sc[...]
    c = c_sc[...]
    whh = whh_ref[...]

    # ---- Sequential recurrence over the chunk (compile-time unrolled) ----
    for t in range(Tc):
        gates = gx[:, t, :] + jnp.dot(h, whh, preferred_element_type=jnp.float32)
        # PyTorch gate order: input, forget, cell(g), output
        i_g = jax.nn.sigmoid(gates[:, 0 * H:1 * H])
        f_g = jax.nn.sigmoid(gates[:, 1 * H:2 * H])
        g_g = jnp.tanh(gates[:, 2 * H:3 * H])
        o_g = jax.nn.sigmoid(gates[:, 3 * H:4 * H])
        c = f_g * c + i_g * g_g
        h = o_g * jnp.tanh(c)
        z_ref[:, t, :] = h                       # lane-dense (H-wide) static store

    h_sc[...] = h
    c_sc[...] = c

    @pl.when(c_idx == pl.num_programs(1) - 1)
    def _():
        h_out_ref[...] = h


def _pick_time_chunk(T):
    # Largest multiple-of-8 divisor of T up to 32; otherwise process the whole
    # sequence in a single chunk (grid of 1 along time).
    for tc in (32, 16, 8):
        if T % tc == 0:
            return tc
    return T


def _pick_batch_chunk(B):
    # Keep batch whole when small; otherwise chunk by a multiple of 8 so the
    # "parallel" batch grid axis can be sharded across TensorCores (v7x).
    if B <= 8:
        return B
    for bc in (128, 64, 32, 16, 8):
        if B % bc == 0:
            return bc
    return B


@jax.jit
def decoder_forward(x_btd, w_ih, w_hh, b_ih, b_hh, w_out, b_out):
    """x_btd: (B, T, H) float32 (batch_first, like the PyTorch module).

    Returns (y, hidden_state) with shapes ((B, T, 1), (1, B, H)).
    """
    B, T, H = x_btd.shape
    Tc = _pick_time_chunk(T)
    Bc = _pick_batch_chunk(B)
    nt = T // Tc
    nb = B // Bc

    wih_t = jnp.transpose(w_ih)                  # (H, 4H)
    whh_t = jnp.transpose(w_hh)                  # (H, 4H)
    bias = (b_ih + b_hh).reshape(1, 4 * H)       # fused bias, added once per chunk

    # Advisory cost hint for XLA's scheduler.
    flops = 2 * B * T * H * (8 * H)              # x@Wih + h@Whh per step
    transcendentals = 5 * B * T * H              # 3 sigmoid + 2 tanh per step
    bytes_accessed = 4 * (2 * B * T * H + 2 * H * 4 * H + 4 * H + B * H)

    grid_spec = pltpu.PrefetchScalarGridSpec(
        num_scalar_prefetch=0,
        grid=(nb, nt),                           # (parallel batch, sequential time)
        in_specs=[
            pl.BlockSpec((Bc, Tc, H), lambda b, c: (b, c, 0)),       # x chunk (batch_first)
            pl.BlockSpec((H, 4 * H), lambda b, c: (0, 0)),           # W_ih^T (resident)
            pl.BlockSpec((H, 4 * H), lambda b, c: (0, 0)),           # W_hh^T (resident)
            pl.BlockSpec((1, 4 * H), lambda b, c: (0, 0)),           # fused bias
        ],
        out_specs=[
            pl.BlockSpec((Bc, Tc, H), lambda b, c: (b, c, 0)),       # hidden sequence z
            pl.BlockSpec((Bc, H), lambda b, c: (b, 0)),              # final hidden state
        ],
        scratch_shapes=[
            pltpu.VMEM((Bc, H), jnp.float32),                        # h carry
            pltpu.VMEM((Bc, H), jnp.float32),                        # c carry
        ],
    )

    z_bth, h_last = pl.pallas_call(
        _decoder_kernel,
        grid_spec=grid_spec,
        out_shape=(
            jax.ShapeDtypeStruct((B, T, H), jnp.float32),
            jax.ShapeDtypeStruct((B, H), jnp.float32),
        ),
        compiler_params=pltpu.CompilerParams(
            dimension_semantics=("parallel", "arbitrary"),
            vmem_limit_bytes=64 * 1024 * 1024,
        ),
        cost_estimate=pl.CostEstimate(
            flops=flops,
            transcendentals=transcendentals,
            bytes_accessed=bytes_accessed,
        ),
    )(x_btd, wih_t, whh_t, bias)
    # TODO(synk): for very large H, pass W_ih^T/W_hh^T via memory_space=pl.ANY and
    # DMA them once into persistent VMEM to avoid double-buffered weight copies.

    # Output head applied once over the whole sequence (outside the recurrence):
    # (B*T, H) @ (H, 1) + b -> (B, T, 1).  Lane-dense kernel output, batched head.
    y = (z_bth.reshape(B * T, H) @ jnp.transpose(w_out) + b_out).reshape(B, T, 1)
    hidden_state = h_last[None, :, :]            # (1, B, H) like PyTorch
    return y, hidden_state


def _reference_forward(x_btd, w_ih, w_hh, b_ih, b_hh, w_out, b_out):
    """Pure-JAX reference (lax.scan LSTM) for correctness checking."""
    B, T, H = x_btd.shape
    bias = b_ih + b_hh

    def step(carry, x_t):
        h, c = carry
        gates = x_t @ w_ih.T + h @ w_hh.T + bias
        i = jax.nn.sigmoid(gates[:, 0 * H:1 * H])
        f = jax.nn.sigmoid(gates[:, 1 * H:2 * H])
        g = jnp.tanh(gates[:, 2 * H:3 * H])
        o = jax.nn.sigmoid(gates[:, 3 * H:4 * H])
        c_new = f * c + i * g
        h_new = o * jnp.tanh(c_new)
        return (h_new, c_new), h_new

    init = (jnp.zeros((B, H), jnp.float32), jnp.zeros((B, H), jnp.float32))
    (h_last, _), z_tbh = jax.lax.scan(step, init, jnp.transpose(x_btd, (1, 0, 2)))
    z_bth = jnp.transpose(z_tbh, (1, 0, 2))
    y = z_bth @ w_out.T + b_out
    return y, h_last[None, :, :]


if __name__ == "__main__":
    # Small shapes consistent with the module: batch_first LSTM input (B, T, H).
    B, T, H = 4, 8, 32

    key = jax.random.PRNGKey(0)
    kx, k1, k2, k3, k4, k5, k6 = jax.random.split(key, 7)
    scale = 1.0 / jnp.sqrt(H)

    x = jax.random.normal(kx, (B, T, H), dtype=jnp.float32)

    # Deterministic synthetic parameters (PyTorch nn.LSTM / nn.Linear shapes).
    w_ih = jax.random.uniform(k1, (4 * H, H), jnp.float32, -scale, scale)   # weight_ih_l0
    w_hh = jax.random.uniform(k2, (4 * H, H), jnp.float32, -scale, scale)   # weight_hh_l0
    b_ih = jax.random.uniform(k3, (4 * H,), jnp.float32, -scale, scale)     # bias_ih_l0
    b_hh = jax.random.uniform(k4, (4 * H,), jnp.float32, -scale, scale)     # bias_hh_l0
    w_out = jax.random.uniform(k5, (1, H), jnp.float32, -scale, scale)      # output_layer.weight
    b_out = jax.random.uniform(k6, (1,), jnp.float32, -scale, scale)        # output_layer.bias

    y, hidden = decoder_forward(x, w_ih, w_hh, b_ih, b_hh, w_out, b_out)
    jax.block_until_ready((y, hidden))

    y_ref, hidden_ref = _reference_forward(x, w_ih, w_hh, b_ih, b_hh, w_out, b_out)
    assert y.shape == (B, T, 1) and hidden.shape == (1, B, H)
    assert jnp.allclose(y, y_ref, atol=1e-4, rtol=1e-4)
    assert jnp.allclose(hidden, hidden_ref, atol=1e-4, rtol=1e-4)

    print("KERNEL_OK")
</pallas_src>

<mosaic_0001>
module attributes {stable_mosaic.version = 11 : i64} {
  func.func @_decoder_kernel(%arg0: i32, %arg1: i32, %arg2: memref<4x8x32xf32, #tpu.memory_space<vmem>>, %arg3: memref<32x128xf32, #tpu.memory_space<vmem>>, %arg4: memref<32x128xf32, #tpu.memory_space<vmem>>, %arg5: memref<1x128xf32, #tpu.memory_space<vmem>>, %arg6: memref<4x8x32xf32, #tpu.memory_space<vmem>>, %arg7: memref<4x32xf32, #tpu.memory_space<vmem>>, %arg8: memref<4x32xf32, #tpu.memory_space<vmem>>, %arg9: memref<4x32xf32, #tpu.memory_space<vmem>>) attributes {dimension_semantics = [#tpu.dimension_semantics<parallel>, #tpu.dimension_semantics<arbitrary>], iteration_bounds = array<i64: 1, 1>, scalar_prefetch = 0 : i64, scratch_operands = 2 : i64, tpu.core_type = #tpu.core_type<tc>, window_params = [{transform_indices = @transform_0, window_bounds = array<i64: 4, 8, 32>}, {pipeline_mode = #tpu.pipeline_mode<synchronous>, transform_indices = @transform_1, window_bounds = array<i64: 32, 128>}, {pipeline_mode = #tpu.pipeline_mode<synchronous>, transform_indices = @transform_2, window_bounds = array<i64: 32, 128>}, {pipeline_mode = #tpu.pipeline_mode<synchronous>, transform_indices = @transform_3, window_bounds = array<i64: 1, 128>}, {transform_indices = @transform_4, window_bounds = array<i64: 4, 8, 32>}, {transform_indices = @transform_5, window_bounds = array<i64: 4, 32>}]} {
    %c0_i32 = arith.constant 0 : i32
    %0 = arith.cmpi eq, %arg1, %c0_i32 : i32
    %1 = arith.extui %0 : i1 to i32
    %c0_i32_0 = arith.constant 0 : i32
    %2 = arith.cmpi ne, %1, %c0_i32_0 : i32
    scf.if %2 {
      %cst_68 = arith.constant 0.000000e+00 : f32
      %275 = vector.broadcast %cst_68 : f32 to vector<4x32xf32>
      %c0_69 = arith.constant 0 : index
      %c0_70 = arith.constant 0 : index
      %276 = vector.load %arg8[%c0_69, %c0_70] : memref<4x32xf32, #tpu.memory_space<vmem>>, vector<4x32xf32>
      tpu.vector_store %arg8[%c0_69, %c0_70], %275 {strides = array<i32>} : memref<4x32xf32, #tpu.memory_space<vmem>>, vector<4x32xf32>,
      %cst_71 = arith.constant 0.000000e+00 : f32
      %277 = vector.broadcast %cst_71 : f32 to vector<4x32xf32>
      %c0_72 = arith.constant 0 : index
      %c0_73 = arith.constant 0 : index
      %278 = vector.load %arg9[%c0_72, %c0_73] : memref<4x32xf32, #tpu.memory_space<vmem>>, vector<4x32xf32>
      tpu.vector_store %arg9[%c0_72, %c0_73], %277 {strides = array<i32>} : memref<4x32xf32, #tpu.memory_space<vmem>>, vector<4x32xf32>,
    } else {
    }
    %c0 = arith.constant 0 : index
    %c0_1 = arith.constant 0 : index
    %c0_2 = arith.constant 0 : index
    %3 = vector.load %arg2[%c0, %c0_1, %c0_2] : memref<4x8x32xf32, #tpu.memory_space<vmem>>, vector<4x8x32xf32>
    %4 = vector.shape_cast %3 : vector<4x8x32xf32> to vector<32x32xf32>
    %c0_3 = arith.constant 0 : index
    %c0_4 = arith.constant 0 : index
    %5 = vector.load %arg3[%c0_3, %c0_4] : memref<32x128xf32, #tpu.memory_space<vmem>>, vector<32x128xf32>
    %cst = arith.constant dense<0.000000e+00> : vector<32x128xf32>
    %6 = tpu.matmul %4, %5, %cst {dimension_numbers = #tpu.dot_dimension_numbers<[1], [0], [0], [1], [0, 0, 1, 1], [], []>} : vector<32x32xf32>, vector<32x128xf32>, vector<32x128xf32> -> vector<32x128xf32>
    %c0_5 = arith.constant 0 : index
    %c0_6 = arith.constant 0 : index
    %7 = vector.load %arg5[%c0_5, %c0_6] : memref<1x128xf32, #tpu.memory_space<vmem>>, vector<1x128xf32>
    %8 = vector.broadcast %7 : vector<1x128xf32> to vector<32x128xf32>
    %9 = arith.addf %6, %8 : vector<32x128xf32>
    %10 = vector.shape_cast %9 : vector<32x128xf32> to vector<4x8x128xf32>
    %c0_7 = arith.constant 0 : index
    %c0_8 = arith.constant 0 : index
    %11 = vector.load %arg8[%c0_7, %c0_8] : memref<4x32xf32, #tpu.memory_space<vmem>>, vector<4x32xf32>
    %c0_9 = arith.constant 0 : index
    %c0_10 = arith.constant 0 : index
    %12 = vector.load %arg9[%c0_9, %c0_10] : memref<4x32xf32, #tpu.memory_space<vmem>>, vector<4x32xf32>
    %c0_11 = arith.constant 0 : index
    %c0_12 = arith.constant 0 : index
    %13 = vector.load %arg4[%c0_11, %c0_12] : memref<32x128xf32, #tpu.memory_space<vmem>>, vector<32x128xf32>
    %14 = vector.extract_strided_slice %10 {offsets = [0, 0, 0], sizes = [4, 1, 128], strides = [1, 1, 1]} : vector<4x8x128xf32> to vector<4x1x128xf32>
    %15 = vector.shape_cast %14 : vector<4x1x128xf32> to vector<4x128xf32>
    %cst_13 = arith.constant dense<0.000000e+00> : vector<4x128xf32>
    %16 = tpu.matmul %11, %13, %cst_13 {dimension_numbers = #tpu.dot_dimension_numbers<[1], [0], [0], [1], [0, 0, 1, 1], [], []>} : vector<4x32xf32>, vector<32x128xf32>, vector<4x128xf32> -> vector<4x128xf32>
    %17 = arith.addf %15, %16 : vector<4x128xf32>
    %18 = vector.extract_strided_slice %17 {offsets = [0, 0], sizes = [4, 32], strides = [1, 1]} : vector<4x128xf32> to vector<4x32xf32>
    %19 = arith.negf %18 : vector<4x32xf32>
    %20 = math.exp %19 : vector<4x32xf32>
    %cst_14 = arith.constant 1.000000e+00 : f32
    %21 = vector.broadcast %cst_14 : f32 to vector<4x32xf32>
    %22 = arith.addf %21, %20 : vector<4x32xf32>
    %23 = arith.divf %21, %22 : vector<4x32xf32>
    %24 = vector.extract_strided_slice %17 {offsets = [0, 32], sizes = [4, 32], strides = [1, 1]} : vector<4x128xf32> to vector<4x32xf32>
    %25 = arith.negf %24 : vector<4x32xf32>
    %26 = math.exp %25 : vector<4x32xf32>
    %cst_15 = arith.constant 1.000000e+00 : f32
    %27 = vector.broadcast %cst_15 : f32 to vector<4x32xf32>
    %28 = arith.addf %27, %26 : vector<4x32xf32>
    %29 = arith.divf %27, %28 : vector<4x32xf32>
    %30 = vector.extract_strided_slice %17 {offsets = [0, 64], sizes = [4, 32], strides = [1, 1]} : vector<4x128xf32> to vector<4x32xf32>
    %31 = math.tanh %30 : vector<4x32xf32>
    %32 = vector.extract_strided_slice %17 {offsets = [0, 96], sizes = [4, 32], strides = [1, 1]} : vector<4x128xf32> to vector<4x32xf32>
    %33 = arith.negf %32 : vector<4x32xf32>
    %34 = math.exp %33 : vector<4x32xf32>
    %cst_16 = arith.constant 1.000000e+00 : f32
    %35 = vector.broadcast %cst_16 : f32 to vector<4x32xf32>
    %36 = arith.addf %35, %34 : vector<4x32xf32>
    %37 = arith.divf %35, %36 : vector<4x32xf32>
    %38 = arith.mulf %29, %12 : vector<4x32xf32>
    %39 = arith.mulf %23, %31 : vector<4x32xf32>
    %40 = arith.addf %38, %39 : vector<4x32xf32>
    %41 = math.tanh %40 : vector<4x32xf32>
    %42 = arith.mulf %37, %41 : vector<4x32xf32>
    %c0_17 = arith.constant 0 : index
    %c0_18 = arith.constant 0 : index
    %c0_19 = arith.constant 0 : index
    %43 = vector.load %arg6[%c0_17, %c0_18, %c0_19] : memref<4x8x32xf32, #tpu.memory_space<vmem>>, vector<4x1x32xf32>
    %44 = vector.shape_cast %43 : vector<4x1x32xf32> to vector<4x32xf32>
    %45 = vector.shape_cast %42 : vector<4x32xf32> to vector<4x1x32xf32>
    tpu.vector_store %arg6[%c0_17, %c0_18, %c0_19], %45 {strides = array<i32>} : memref<4x8x32xf32, #tpu.memory_space<vmem>>, vector<4x1x32xf32>,
    %46 = vector.extract_strided_slice %10 {offsets = [0, 1, 0], sizes = [4, 1, 128], strides = [1, 1, 1]} : vector<4x8x128xf32> to vector<4x1x128xf32>
    %47 = vector.shape_cast %46 : vector<4x1x128xf32> to vector<4x128xf32>
    %cst_20 = arith.constant dense<0.000000e+00> : vector<4x128xf32>
    %48 = tpu.matmul %42, %13, %cst_20 {dimension_numbers = #tpu.dot_dimension_numbers<[1], [0], [0], [1], [0, 0, 1, 1], [], []>} : vector<4x32xf32>, vector<32x128xf32>, vector<4x128xf32> -> vector<4x128xf32>
    %49 = arith.addf %47, %48 : vector<4x128xf32>
    %50 = vector.extract_strided_slice %49 {offsets = [0, 0], sizes = [4, 32], strides = [1, 1]} : vector<4x128xf32> to vector<4x32xf32>
    %51 = arith.negf %50 : vector<4x32xf32>
    %52 = math.exp %51 : vector<4x32xf32>
    %cst_21 = arith.constant 1.000000e+00 : f32
    %53 = vector.broadcast %cst_21 : f32 to vector<4x32xf32>
    %54 = arith.addf %53, %52 : vector<4x32xf32>
    %55 = arith.divf %53, %54 : vector<4x32xf32>
    %56 = vector.extract_strided_slice %49 {offsets = [0, 32], sizes = [4, 32], strides = [1, 1]} : vector<4x128xf32> to vector<4x32xf32>
    %57 = arith.negf %56 : vector<4x32xf32>
    %58 = math.exp %57 : vector<4x32xf32>
    %cst_22 = arith.constant 1.000000e+00 : f32
    %59 = vector.broadcast %cst_22 : f32 to vector<4x32xf32>
    %60 = arith.addf %59, %58 : vector<4x32xf32>
    %61 = arith.divf %59, %60 : vector<4x32xf32>
    %62 = vector.extract_strided_slice %49 {offsets = [0, 64], sizes = [4, 32], strides = [1, 1]} : vector<4x128xf32> to vector<4x32xf32>
    %63 = math.tanh %62 : vector<4x32xf32>
    %64 = vector.extract_strided_slice %49 {offsets = [0, 96], sizes = [4, 32], strides = [1, 1]} : vector<4x128xf32> to vector<4x32xf32>
    %65 = arith.negf %64 : vector<4x32xf32>
    %66 = math.exp %65 : vector<4x32xf32>
    %cst_23 = arith.constant 1.000000e+00 : f32
    %67 = vector.broadcast %cst_23 : f32 to vector<4x32xf32>
    %68 = arith.addf %67, %66 : vector<4x32xf32>
    %69 = arith.divf %67, %68 : vector<4x32xf32>
    %70 = arith.mulf %61, %40 : vector<4x32xf32>
    %71 = arith.mulf %55, %63 : vector<4x32xf32>
    %72 = arith.addf %70, %71 : vector<4x32xf32>
    %73 = math.tanh %72 : vector<4x32xf32>
    %74 = arith.mulf %69, %73 : vector<4x32xf32>
    %c0_24 = arith.constant 0 : index
    %c1 = arith.constant 1 : index
    %c0_25 = arith.constant 0 : index
    %75 = vector.load %arg6[%c0_24, %c1, %c0_25] : memref<4x8x32xf32, #tpu.memory_space<vmem>>, vector<4x1x32xf32>
    %76 = vector.shape_cast %75 : vector<4x1x32xf32> to vector<4x32xf32>
    %77 = vector.shape_cast %74 : vector<4x32xf32> to vector<4x1x32xf32>
    tpu.vector_store %arg6[%c0_24, %c1, %c0_25], %77 {strides = array<i32>} : memref<4x8x32xf32, #tpu.memory_space<vmem>>, vector<4x1x32xf32>,
    %78 = vector.extract_strided_slice %10 {offsets = [0, 2, 0], sizes = [4, 1, 128], strides = [1, 1, 1]} : vector<4x8x128xf32> to vector<4x1x128xf32>
    %79 = vector.shape_cast %78 : vector<4x1x128xf32> to vector<4x128xf32>
    %cst_26 = arith.constant dense<0.000000e+00> : vector<4x128xf32>
    %80 = tpu.matmul %74, %13, %cst_26 {dimension_numbers = #tpu.dot_dimension_numbers<[1], [0], [0], [1], [0, 0, 1, 1], [], []>} : vector<4x32xf32>, vector<32x128xf32>, vector<4x128xf32> -> vector<4x128xf32>
    %81 = arith.addf %79, %80 : vector<4x128xf32>
    %82 = vector.extract_strided_slice %81 {offsets = [0, 0], sizes = [4, 32], strides = [1, 1]} : vector<4x128xf32> to vector<4x32xf32>
    %83 = arith.negf %82 : vector<4x32xf32>
    %84 = math.exp %83 : vector<4x32xf32>
    %cst_27 = arith.constant 1.000000e+00 : f32
    %85 = vector.broadcast %cst_27 : f32 to vector<4x32xf32>
    %86 = arith.addf %85, %84 : vector<4x32xf32>
    %87 = arith.divf %85, %86 : vector<4x32xf32>
    %88 = vector.extract_strided_slice %81 {offsets = [0, 32], sizes = [4, 32], strides = [1, 1]} : vector<4x128xf32> to vector<4x32xf32>
    %89 = arith.negf %88 : vector<4x32xf32>
    %90 = math.exp %89 : vector<4x32xf32>
    %cst_28 = arith.constant 1.000000e+00 : f32
    %91 = vector.broadcast %cst_28 : f32 to vector<4x32xf32>
    %92 = arith.addf %91, %90 : vector<4x32xf32>
    %93 = arith.divf %91, %92 : vector<4x32xf32>
    %94 = vector.extract_strided_slice %81 {offsets = [0, 64], sizes = [4, 32], strides = [1, 1]} : vector<4x128xf32> to vector<4x32xf32>
    %95 = math.tanh %94 : vector<4x32xf32>
    %96 = vector.extract_strided_slice %81 {offsets = [0, 96], sizes = [4, 32], strides = [1, 1]} : vector<4x128xf32> to vector<4x32xf32>
    %97 = arith.negf %96 : vector<4x32xf32>
    %98 = math.exp %97 : vector<4x32xf32>
    %cst_29 = arith.constant 1.000000e+00 : f32
    %99 = vector.broadcast %cst_29 : f32 to vector<4x32xf32>
    %100 = arith.addf %99, %98 : vector<4x32xf32>
    %101 = arith.divf %99, %100 : vector<4x32xf32>
    %102 = arith.mulf %93, %72 : vector<4x32xf32>
    %103 = arith.mulf %87, %95 : vector<4x32xf32>
    %104 = arith.addf %102, %103 : vector<4x32xf32>
    %105 = math.tanh %104 : vector<4x32xf32>
    %106 = arith.mulf %101, %105 : vector<4x32xf32>
    %c0_30 = arith.constant 0 : index
    %c2 = arith.constant 2 : index
    %c0_31 = arith.constant 0 : index
    %107 = vector.load %arg6[%c0_30, %c2, %c0_31] : memref<4x8x32xf32, #tpu.memory_space<vmem>>, vector<4x1x32xf32>
    %108 = vector.shape_cast %107 : vector<4x1x32xf32> to vector<4x32xf32>
    %109 = vector.shape_cast %106 : vector<4x32xf32> to vector<4x1x32xf32>
    tpu.vector_store %arg6[%c0_30, %c2, %c0_31], %109 {strides = array<i32>} : memref<4x8x32xf32, #tpu.memory_space<vmem>>, vector<4x1x32xf32>,
    %110 = vector.extract_strided_slice %10 {offsets = [0, 3, 0], sizes = [4, 1, 128], strides = [1, 1, 1]} : vector<4x8x128xf32> to vector<4x1x128xf32>
    %111 = vector.shape_cast %110 : vector<4x1x128xf32> to vector<4x128xf32>
    %cst_32 = arith.constant dense<0.000000e+00> : vector<4x128xf32>
    %112 = tpu.matmul %106, %13, %cst_32 {dimension_numbers = #tpu.dot_dimension_numbers<[1], [0], [0], [1], [0, 0, 1, 1], [], []>} : vector<4x32xf32>, vector<32x128xf32>, vector<4x128xf32> -> vector<4x128xf32>
    %113 = arith.addf %111, %112 : vector<4x128xf32>
    %114 = vector.extract_strided_slice %113 {offsets = [0, 0], sizes = [4, 32], strides = [1, 1]} : vector<4x128xf32> to vector<4x32xf32>
    %115 = arith.negf %114 : vector<4x32xf32>
    %116 = math.exp %115 : vector<4x32xf32>
    %cst_33 = arith.constant 1.000000e+00 : f32
    %117 = vector.broadcast %cst_33 : f32 to vector<4x32xf32>
    %118 = arith.addf %117, %116 : vector<4x32xf32>
    %119 = arith.divf %117, %118 : vector<4x32xf32>
    %120 = vector.extract_strided_slice %113 {offsets = [0, 32], sizes = [4, 32], strides = [1, 1]} : vector<4x128xf32> to vector<4x32xf32>
    %121 = arith.negf %120 : vector<4x32xf32>
    %122 = math.exp %121 : vector<4x32xf32>
    %cst_34 = arith.constant 1.000000e+00 : f32
    %123 = vector.broadcast %cst_34 : f32 to vector<4x32xf32>
    %124 = arith.addf %123, %122 : vector<4x32xf32>
    %125 = arith.divf %123, %124 : vector<4x32xf32>
    %126 = vector.extract_strided_slice %113 {offsets = [0, 64], sizes = [4, 32], strides = [1, 1]} : vector<4x128xf32> to vector<4x32xf32>
    %127 = math.tanh %126 : vector<4x32xf32>
    %128 = vector.extract_strided_slice %113 {offsets = [0, 96], sizes = [4, 32], strides = [1, 1]} : vector<4x128xf32> to vector<4x32xf32>
    %129 = arith.negf %128 : vector<4x32xf32>
    %130 = math.exp %129 : vector<4x32xf32>
    %cst_35 = arith.constant 1.000000e+00 : f32
    %131 = vector.broadcast %cst_35 : f32 to vector<4x32xf32>
    %132 = arith.addf %131, %130 : vector<4x32xf32>
    %133 = arith.divf %131, %132 : vector<4x32xf32>
    %134 = arith.mulf %125, %104 : vector<4x32xf32>
    %135 = arith.mulf %119, %127 : vector<4x32xf32>
    %136 = arith.addf %134, %135 : vector<4x32xf32>
    %137 = math.tanh %136 : vector<4x32xf32>
    %138 = arith.mulf %133, %137 : vector<4x32xf32>
    %c0_36 = arith.constant 0 : index
    %c3 = arith.constant 3 : index
    %c0_37 = arith.constant 0 : index
    %139 = vector.load %arg6[%c0_36, %c3, %c0_37] : memref<4x8x32xf32, #tpu.memory_space<vmem>>, vector<4x1x32xf32>
    %140 = vector.shape_cast %139 : vector<4x1x32xf32> to vector<4x32xf32>
    %141 = vector.shape_cast %138 : vector<4x32xf32> to vector<4x1x32xf32>
    tpu.vector_store %arg6[%c0_36, %c3, %c0_37], %141 {strides = array<i32>} : memref<4x8x32xf32, #tpu.memory_space<vmem>>, vector<4x1x32xf32>,
    %142 = vector.extract_strided_slice %10 {offsets = [0, 4, 0], sizes = [4, 1, 128], strides = [1, 1, 1]} : vector<4x8x128xf32> to vector<4x1x128xf32>
    %143 = vector.shape_cast %142 : vector<4x1x128xf32> to vector<4x128xf32>
    %cst_38 = arith.constant dense<0.000000e+00> : vector<4x128xf32>
    %144 = tpu.matmul %138, %13, %cst_38 {dimension_numbers = #tpu.dot_dimension_numbers<[1], [0], [0], [1], [0, 0, 1, 1], [], []>} : vector<4x32xf32>, vector<32x128xf32>, vector<4x128xf32> -> vector<4x128xf32>
    %145 = arith.addf %143, %144 : vector<4x128xf32>
    %146 = vector.extract_strided_slice %145 {offsets = [0, 0], sizes = [4, 32], strides = [1, 1]} : vector<4x128xf32> to vector<4x32xf32>
    %147 = arith.negf %146 : vector<4x32xf32>
    %148 = math.exp %147 : vector<4x32xf32>
    %cst_39 = arith.constant 1.000000e+00 : f32
    %149 = vector.broadcast %cst_39 : f32 to vector<4x32xf32>
    %150 = arith.addf %149, %148 : vector<4x32xf32>
    %151 = arith.divf %149, %150 : vector<4x32xf32>
    %152 = vector.extract_strided_slice %145 {offsets = [0, 32], sizes = [4, 32], strides = [1, 1]} : vector<4x128xf32> to vector<4x32xf32>
    %153 = arith.negf %152 : vector<4x32xf32>
    %154 = math.exp %153 : vector<4x32xf32>
    %cst_40 = arith.constant 1.000000e+00 : f32
    %155 = vector.broadcast %cst_40 : f32 to vector<4x32xf32>
    %156 = arith.addf %155, %154 : vector<4x32xf32>
    %157 = arith.divf %155, %156 : vector<4x32xf32>
    %158 = vector.extract_strided_slice %145 {offsets = [0, 64], sizes = [4, 32], strides = [1, 1]} : vector<4x128xf32> to vector<4x32xf32>
    %159 = math.tanh %158 : vector<4x32xf32>
    %160 = vector.extract_strided_slice %145 {offsets = [0, 96], sizes = [4, 32], strides = [1, 1]} : vector<4x128xf32> to vector<4x32xf32>
    %161 = arith.negf %160 : vector<4x32xf32>
    %162 = math.exp %161 : vector<4x32xf32>
    %cst_41 = arith.constant 1.000000e+00 : f32
    %163 = vector.broadcast %cst_41 : f32 to vector<4x32xf32>
    %164 = arith.addf %163, %162 : vector<4x32xf32>
    %165 = arith.divf %163, %164 : vector<4x32xf32>
    %166 = arith.mulf %157, %136 : vector<4x32xf32>
    %167 = arith.mulf %151, %159 : vector<4x32xf32>
    %168 = arith.addf %166, %167 : vector<4x32xf32>
    %169 = math.tanh %168 : vector<4x32xf32>
    %170 = arith.mulf %165, %169 : vector<4x32xf32>
    %c0_42 = arith.constant 0 : index
    %c4 = arith.constant 4 : index
    %c0_43 = arith.constant 0 : index
    %171 = vector.load %arg6[%c0_42, %c4, %c0_43] : memref<4x8x32xf32, #tpu.memory_space<vmem>>, vector<4x1x32xf32>
    %172 = vector.shape_cast %171 : vector<4x1x32xf32> to vector<4x32xf32>
    %173 = vector.shape_cast %170 : vector<4x32xf32> to vector<4x1x32xf32>
    tpu.vector_store %arg6[%c0_42, %c4, %c0_43], %173 {strides = array<i32>} : memref<4x8x32xf32, #tpu.memory_space<vmem>>, vector<4x1x32xf32>,
    %174 = vector.extract_strided_slice %10 {offsets = [0, 5, 0], sizes = [4, 1, 128], strides = [1, 1, 1]} : vector<4x8x128xf32> to vector<4x1x128xf32>
    %175 = vector.shape_cast %174 : vector<4x1x128xf32> to vector<4x128xf32>
    %cst_44 = arith.constant dense<0.000000e+00> : vector<4x128xf32>
    %176 = tpu.matmul %170, %13, %cst_44 {dimension_numbers = #tpu.dot_dimension_numbers<[1], [0], [0], [1], [0, 0, 1, 1], [], []>} : vector<4x32xf32>, vector<32x128xf32>, vector<4x128xf32> -> vector<4x128xf32>
    %177 = arith.addf %175, %176 : vector<4x128xf32>
    %178 = vector.extract_strided_slice %177 {offsets = [0, 0], sizes = [4, 32], strides = [1, 1]} : vector<4x128xf32> to vector<4x32xf32>
    %179 = arith.negf %178 : vector<4x32xf32>
    %180 = math.exp %179 : vector<4x32xf32>
    %cst_45 = arith.constant 1.000000e+00 : f32
    %181 = vector.broadcast %cst_45 : f32 to vector<4x32xf32>
    %182 = arith.addf %181, %180 : vector<4x32xf32>
    %183 = arith.divf %181, %182 : vector<4x32xf32>
    %184 = vector.extract_strided_slice %177 {offsets = [0, 32], sizes = [4, 32], strides = [1, 1]} : vector<4x128xf32> to vector<4x32xf32>
    %185 = arith.negf %184 : vector<4x32xf32>
    %186 = math.exp %185 : vector<4x32xf32>
    %cst_46 = arith.constant 1.000000e+00 : f32
    %187 = vector.broadcast %cst_46 : f32 to vector<4x32xf32>
    %188 = arith.addf %187, %186 : vector<4x32xf32>
    %189 = arith.divf %187, %188 : vector<4x32xf32>
    %190 = vector.extract_strided_slice %177 {offsets = [0, 64], sizes = [4, 32], strides = [1, 1]} : vector<4x128xf32> to vector<4x32xf32>
    %191 = math.tanh %190 : vector<4x32xf32>
    %192 = vector.extract_strided_slice %177 {offsets = [0, 96], sizes = [4, 32], strides = [1, 1]} : vector<4x128xf32> to vector<4x32xf32>
    %193 = arith.negf %192 : vector<4x32xf32>
    %194 = math.exp %193 : vector<4x32xf32>
    %cst_47 = arith.constant 1.000000e+00 : f32
    %195 = vector.broadcast %cst_47 : f32 to vector<4x32xf32>
    %196 = arith.addf %195, %194 : vector<4x32xf32>
    %197 = arith.divf %195, %196 : vector<4x32xf32>
    %198 = arith.mulf %189, %168 : vector<4x32xf32>
    %199 = arith.mulf %183, %191 : vector<4x32xf32>
    %200 = arith.addf %198, %199 : vector<4x32xf32>
    %201 = math.tanh %200 : vector<4x32xf32>
    %202 = arith.mulf %197, %201 : vector<4x32xf32>
    %c0_48 = arith.constant 0 : index
    %c5 = arith.constant 5 : index
    %c0_49 = arith.constant 0 : index
    %203 = vector.load %arg6[%c0_48, %c5, %c0_49] : memref<4x8x32xf32, #tpu.memory_space<vmem>>, vector<4x1x32xf32>
    %204 = vector.shape_cast %203 : vector<4x1x32xf32> to vector<4x32xf32>
    %205 = vector.shape_cast %202 : vector<4x32xf32> to vector<4x1x32xf32>
    tpu.vector_store %arg6[%c0_48, %c5, %c0_49], %205 {strides = array<i32>} : memref<4x8x32xf32, #tpu.memory_space<vmem>>, vector<4x1x32xf32>,
    %206 = vector.extract_strided_slice %10 {offsets = [0, 6, 0], sizes = [4, 1, 128], strides = [1, 1, 1]} : vector<4x8x128xf32> to vector<4x1x128xf32>
    %207 = vector.shape_cast %206 : vector<4x1x128xf32> to vector<4x128xf32>
    %cst_50 = arith.constant dense<0.000000e+00> : vector<4x128xf32>
    %208 = tpu.matmul %202, %13, %cst_50 {dimension_numbers = #tpu.dot_dimension_numbers<[1], [0], [0], [1], [0, 0, 1, 1], [], []>} : vector<4x32xf32>, vector<32x128xf32>, vector<4x128xf32> -> vector<4x128xf32>
    %209 = arith.addf %207, %208 : vector<4x128xf32>
    %210 = vector.extract_strided_slice %209 {offsets = [0, 0], sizes = [4, 32], strides = [1, 1]} : vector<4x128xf32> to vector<4x32xf32>
    %211 = arith.negf %210 : vector<4x32xf32>
    %212 = math.exp %211 : vector<4x32xf32>
    %cst_51 = arith.constant 1.000000e+00 : f32
    %213 = vector.broadcast %cst_51 : f32 to vector<4x32xf32>
    %214 = arith.addf %213, %212 : vector<4x32xf32>
    %215 = arith.divf %213, %214 : vector<4x32xf32>
    %216 = vector.extract_strided_slice %209 {offsets = [0, 32], sizes = [4, 32], strides = [1, 1]} : vector<4x128xf32> to vector<4x32xf32>
    %217 = arith.negf %216 : vector<4x32xf32>
    %218 = math.exp %217 : vector<4x32xf32>
    %cst_52 = arith.constant 1.000000e+00 : f32
    %219 = vector.broadcast %cst_52 : f32 to vector<4x32xf32>
    %220 = arith.addf %219, %218 : vector<4x32xf32>
    %221 = arith.divf %219, %220 : vector<4x32xf32>
    %222 = vector.extract_strided_slice %209 {offsets = [0, 64], sizes = [4, 32], strides = [1, 1]} : vector<4x128xf32> to vector<4x32xf32>
    %223 = math.tanh %222 : vector<4x32xf32>
    %224 = vector.extract_strided_slice %209 {offsets = [0, 96], sizes = [4, 32], strides = [1, 1]} : vector<4x128xf32> to vector<4x32xf32>
    %225 = arith.negf %224 : vector<4x32xf32>
    %226 = math.exp %225 : vector<4x32xf32>
    %cst_53 = arith.constant 1.000000e+00 : f32
    %227 = vector.broadcast %cst_53 : f32 to vector<4x32xf32>
    %228 = arith.addf %227, %226 : vector<4x32xf32>
    %229 = arith.divf %227, %228 : vector<4x32xf32>
    %230 = arith.mulf %221, %200 : vector<4x32xf32>
    %231 = arith.mulf %215, %223 : vector<4x32xf32>
    %232 = arith.addf %230, %231 : vector<4x32xf32>
    %233 = math.tanh %232 : vector<4x32xf32>
    %234 = arith.mulf %229, %233 : vector<4x32xf32>
    %c0_54 = arith.constant 0 : index
    %c6 = arith.constant 6 : index
    %c0_55 = arith.constant 0 : index
    %235 = vector.load %arg6[%c0_54, %c6, %c0_55] : memref<4x8x32xf32, #tpu.memory_space<vmem>>, vector<4x1x32xf32>
    %236 = vector.shape_cast %235 : vector<4x1x32xf32> to vector<4x32xf32>
    %237 = vector.shape_cast %234 : vector<4x32xf32> to vector<4x1x32xf32>
    tpu.vector_store %arg6[%c0_54, %c6, %c0_55], %237 {strides = array<i32>} : memref<4x8x32xf32, #tpu.memory_space<vmem>>, vector<4x1x32xf32>,
    %238 = vector.extract_strided_slice %10 {offsets = [0, 7, 0], sizes = [4, 1, 128], strides = [1, 1, 1]} : vector<4x8x128xf32> to vector<4x1x128xf32>
    %239 = vector.shape_cast %238 : vector<4x1x128xf32> to vector<4x128xf32>
    %cst_56 = arith.constant dense<0.000000e+00> : vector<4x128xf32>
    %240 = tpu.matmul %234, %13, %cst_56 {dimension_numbers = #tpu.dot_dimension_numbers<[1], [0], [0], [1], [0, 0, 1, 1], [], []>} : vector<4x32xf32>, vector<32x128xf32>, vector<4x128xf32> -> vector<4x128xf32>
    %241 = arith.addf %239, %240 : vector<4x128xf32>
    %242 = vector.extract_strided_slice %241 {offsets = [0, 0], sizes = [4, 32], strides = [1, 1]} : vector<4x128xf32> to vector<4x32xf32>
    %243 = arith.negf %242 : vector<4x32xf32>
    %244 = math.exp %243 : vector<4x32xf32>
    %cst_57 = arith.constant 1.000000e+00 : f32
    %245 = vector.broadcast %cst_57 : f32 to vector<4x32xf32>
    %246 = arith.addf %245, %244 : vector<4x32xf32>
    %247 = arith.divf %245, %246 : vector<4x32xf32>
    %248 = vector.extract_strided_slice %241 {offsets = [0, 32], sizes = [4, 32], strides = [1, 1]} : vector<4x128xf32> to vector<4x32xf32>
    %249 = arith.negf %248 : vector<4x32xf32>
    %250 = math.exp %249 : vector<4x32xf32>
    %cst_58 = arith.constant 1.000000e+00 : f32
    %251 = vector.broadcast %cst_58 : f32 to vector<4x32xf32>
    %252 = arith.addf %251, %250 : vector<4x32xf32>
    %253 = arith.divf %251, %252 : vector<4x32xf32>
    %254 = vector.extract_strided_slice %241 {offsets = [0, 64], sizes = [4, 32], strides = [1, 1]} : vector<4x128xf32> to vector<4x32xf32>
    %255 = math.tanh %254 : vector<4x32xf32>
    %256 = vector.extract_strided_slice %241 {offsets = [0, 96], sizes = [4, 32], strides = [1, 1]} : vector<4x128xf32> to vector<4x32xf32>
    %257 = arith.negf %256 : vector<4x32xf32>
    %258 = math.exp %257 : vector<4x32xf32>
    %cst_59 = arith.constant 1.000000e+00 : f32
    %259 = vector.broadcast %cst_59 : f32 to vector<4x32xf32>
    %260 = arith.addf %259, %258 : vector<4x32xf32>
    %261 = arith.divf %259, %260 : vector<4x32xf32>
    %262 = arith.mulf %253, %232 : vector<4x32xf32>
    %263 = arith.mulf %247, %255 : vector<4x32xf32>
    %264 = arith.addf %262, %263 : vector<4x32xf32>
    %265 = math.tanh %264 : vector<4x32xf32>
    %266 = arith.mulf %261, %265 : vector<4x32xf32>
    %c0_60 = arith.constant 0 : index
    %c7 = arith.constant 7 : index
    %c0_61 = arith.constant 0 : index
    %267 = vector.load %arg6[%c0_60, %c7, %c0_61] : memref<4x8x32xf32, #tpu.memory_space<vmem>>, vector<4x1x32xf32>
    %268 = vector.shape_cast %267 : vector<4x1x32xf32> to vector<4x32xf32>
    %269 = vector.shape_cast %266 : vector<4x32xf32> to vector<4x1x32xf32>
    tpu.vector_store %arg6[%c0_60, %c7, %c0_61], %269 {strides = array<i32>} : memref<4x8x32xf32, #tpu.memory_space<vmem>>, vector<4x1x32xf32>,
    %c0_62 = arith.constant 0 : index
    %c0_63 = arith.constant 0 : index
    %270 = vector.load %arg8[%c0_62, %c0_63] : memref<4x32xf32, #tpu.memory_space<vmem>>, vector<4x32xf32>
    tpu.vector_store %arg8[%c0_62, %c0_63], %266 {strides = array<i32>} : memref<4x32xf32, #tpu.memory_space<vmem>>, vector<4x32xf32>,
    %c0_64 = arith.constant 0 : index
    %c0_65 = arith.constant 0 : index
    %271 = vector.load %arg9[%c0_64, %c0_65] : memref<4x32xf32, #tpu.memory_space<vmem>>, vector<4x32xf32>
    tpu.vector_store %arg9[%c0_64, %c0_65], %264 {strides = array<i32>} : memref<4x32xf32, #tpu.memory_space<vmem>>, vector<4x32xf32>,
    %c0_i32_66 = arith.constant 0 : i32
    %272 = arith.cmpi eq, %arg1, %c0_i32_66 : i32
    %273 = arith.extui %272 : i1 to i32
    %c0_i32_67 = arith.constant 0 : i32
    %274 = arith.cmpi ne, %273, %c0_i32_67 : i32
    scf.if %274 {
      %c0_68 = arith.constant 0 : index
      %c0_69 = arith.constant 0 : index
      %275 = vector.load %arg7[%c0_68, %c0_69] : memref<4x32xf32, #tpu.memory_space<vmem>>, vector<4x32xf32>
      tpu.vector_store %arg7[%c0_68, %c0_69], %266 {strides = array<i32>} : memref<4x32xf32, #tpu.memory_space<vmem>>, vector<4x32xf32>,
    } else {
    }
    return
  }
  func.func @transform_0(%arg0: i32, %arg1: i32) -> (i32, i32, i32) {
    %c0_i32 = arith.constant 0 : i32
    %c0_i32_0 = arith.constant 0 : i32
    return %arg0, %arg1, %c0_i32 : i32, i32, i32
  }
  func.func @transform_1(%arg0: i32, %arg1: i32) -> (i32, i32) {
    %c0_i32 = arith.constant 0 : i32
    %c0_i32_0 = arith.constant 0 : i32
    %c0_i32_1 = arith.constant 0 : i32
    return %c0_i32, %c0_i32_0 : i32, i32
  }
  func.func @transform_2(%arg0: i32, %arg1: i32) -> (i32, i32) {
    %c0_i32 = arith.constant 0 : i32
    %c0_i32_0 = arith.constant 0 : i32
    %c0_i32_1 = arith.constant 0 : i32
    return %c0_i32, %c0_i32_0 : i32, i32
  }
  func.func @transform_3(%arg0: i32, %arg1: i32) -> (i32, i32) {
    %c0_i32 = arith.constant 0 : i32
    %c0_i32_0 = arith.constant 0 : i32
    %c0_i32_1 = arith.constant 0 : i32
    return %c0_i32, %c0_i32_0 : i32, i32
  }
  func.func @transform_4(%arg0: i32, %arg1: i32) -> (i32, i32, i32) {
    %c0_i32 = arith.constant 0 : i32
    %c0_i32_0 = arith.constant 0 : i32
    return %arg0, %arg1, %c0_i32 : i32, i32, i32
  }
  func.func @transform_5(%arg0: i32, %arg1: i32) -> (i32, i32) {
    %c0_i32 = arith.constant 0 : i32
    %c0_i32_0 = arith.constant 0 : i32
    return %arg0, %c0_i32 : i32, i32
  }
}

</mosaic_0001>

<bundles_post_ra>
// kernel: decoder_forward.1
= control target key start
LH: loop header
LB: loop body
LE: loop exit
PB: predicated region body
PF: predicated region fallthrough
CT: control target
= control target key end

     0   :  { %11 = vsyncpa [#allocation5], 0  ;;  %s3295_s0 = inlined_call_operand.hbm [shape: f32[4,8,32], index: 0, kind: input, shape index: {}]   ;;  %s3296_s1 = inlined_call_operand.hbm [shape: f32[32,128], index: 1, kind: input, shape index: {}]   ;;  %s3297_s2 = inlined_call_operand.hbm [shape: f32[32,128], index: 2, kind: input, shape index: {}]   ;;  %s3298_s3 = inlined_call_operand.vmem [shape: f32[1,128], index: 3, kind: input, shape index: {}]   ;;  %s3299_s4 = inlined_call_operand.vmem [shape: f32[4,8,32], index: 4, kind: output, shape index: {0}]   ;;  %s3300_s5 = inlined_call_operand.hbm [shape: f32[4,32], index: 5, kind: output, shape index: {1}]  }
   0x1   :  { %12 = vsyncpa [#allocation8], 0 }
   0x2   :  { %13 = vsyncpa [#allocation6], 0  ;;  %s2567_s18 = smov [#allocation7]   ;;  %s2568_s20 = smov [#allocation4]  }
   0x3   :  { %s31_s19 = sshll.u32 %s2567_s18, 4  ;;  %s19_s21 = sshll.u32 %s2568_s20, 4  ;;  %s32_s19 = int_to_ptr.vmem [resolvable:$true] %s31_s19  ;;  %s20_s21 = int_to_ptr.vmem [resolvable:$true] %s19_s21 }
   0x4   :  { %s2489_s22 = scalar_lea.vmem %s32_s19, 512  ;;  %p2494_p1 = scmp.lt.s32.totalorder %s32_s19, %s32_s19 }
   0x5   :  { %p2490_p0 = scmp.ne.s32.totalorder %s32_s19, %s2489_s22  ;;  %p2495_p2 = scmp.lt.s32.totalorder %s2489_s22, %s2489_s22 }
   0x7   :  { %p2496_p3 = por %p2495_p2, %p2494_p1 }
   0x9   :  { %p2497_p4 = pnand %p2496_p3, %p2490_p0 }
   0xb   :  { %2500 = shalt.err (!%p2497_p4)
}
   0xc   :  { %s2569_s23 = smov 128   ;;  %s2570_s24 = smov 8  }
   0xd   :  { %37 = dma.hbm_to_vmem [thread:$0]  %s3296_s1, 512, %s32_s19, [#allocation8], %s2569_s23, %s2569_s23, %s2570_s24  }
   0xe   :  { %s2509_s27 = scalar_lea.vmem %s20_s21, 512  ;;  %p2514_p6 = scmp.lt.s32.totalorder %s20_s21, %s20_s21 }
   0xf   :  { %p2510_p5 = scmp.ne.s32.totalorder %s20_s21, %s2509_s27  ;;  %p2515_p7 = scmp.lt.s32.totalorder %s2509_s27, %s2509_s27 }
  0x11   :  { %p2516_p8 = por %p2515_p7, %p2514_p6 }
  0x13   :  { %p2517_p9 = pnand %p2516_p8, %p2510_p5 }
  0x15   :  { %2520 = shalt.err (!%p2517_p9)
}
  0x16   :  { %25 = dma.hbm_to_vmem [thread:$0]  %s3295_s0, 512, %s20_s21, [#allocation5], %s2569_s23, %s2569_s23, %s2570_s24  }
  0x17   :  { %s2571_s30 = smov [#allocation9]  }
  0x18   :  { %s43_s6 = sshll.u32 %s2571_s30, 4  ;;  %s44_s6 = int_to_ptr.vmem [resolvable:$true] %s43_s6 }
  0x19   :  { %s2529_s7 = scalar_lea.vmem %s44_s6, 512  ;;  %p2534_p11 = scmp.lt.s32.totalorder %s44_s6, %s44_s6 }
  0x1a   :  { %p2530_p10 = scmp.ne.s32.totalorder %s44_s6, %s2529_s7  ;;  %p2535_p12 = scmp.lt.s32.totalorder %s2529_s7, %s2529_s7 }
  0x1c   :  { %p2536_p13 = por %p2535_p12, %p2534_p11 }
  0x1e   :  { %p2537_p0 = pnand %p2536_p13, %p2530_p10 }
  0x20   :  { %2540 = shalt.err (!%p2537_p0)
}
  0x21   :  { %49 = dma.hbm_to_vmem [thread:$0]  %s3297_s2, 512, %s44_s6, [#allocation8], %s2569_s23, %s2569_s23, %s2570_s24  }
  0x22   :  { %2561 = dma.done.wait [#allocation5], 512  }
  0x23   :  { %2562 = vsyncadd [#allocation5], 4294966784 }
  0x24   :  { %2563 = dma.done.wait [#allocation8], 1024  }
  0x25   :  { %2564 = vsyncadd [#allocation8], 4294966272  ;;  %vm65_vm0 = vcmask 257024   ;;  %v2572_v0 = vmov 0.0   ;;  %vm2573_vm1 = vmmov 0   ;;  %v75_v1 = vld [vmem:[#allocation7 + $0x18] sm:$0xff] }
  0x26   :  { %2122 = vmatprep.subr.mxu1 %v2572_v0  ;;  %2130 = vmatprep.mubr.msk.f32.mxu1 %vm2573_vm1, %v2572_v0  ;;  %66 = vst.msk [vmem:[#allocation2] sm:$0xf] %vm65_vm0, %v2572_v0  ;;  %67 = vst.msk [vmem:[#allocation3] sm:$0xf] %vm65_vm0, %v2572_v0  ;;  %v2622_v2 = vld [vmem:[#allocation9 + $0x18] sm:$0xff]  ;;  %v74_v3 = vld [vmem:[#allocation7 + $0x10] sm:$0xff] }
  0x27   :  { %2108 = vmatprep.subr.mxu0 %v75_v1  ;;  %2123 = vmatpush3.msra.mxu1 %v2622_v2  ;;  %v2625_v4 = vld [vmem:[#allocation9 + $0x10] sm:$0xff]  ;;  %v73_v5 = vld [vmem:[#allocation7 + $0x8] sm:$0xff]  ;;  %v72_v7 = vld [vmem:[#allocation7] sm:$0xff]  ;;  %vm83_vm2 = vcmask 261120   ;;  %s2575_s9 = smov 32   ;;  %vm406_vm3 = vcmask 1041409  }
  0x28   :  { %2109 = vmatpush3.msra.mxu0 %v75_v1  ;;  %2124 = vmatprep.subr.mxu1 %v2572_v0  ;;  %v2628_v6 = vld [vmem:[#allocation9 + $0x8] sm:$0xff]  ;;  %v68_v8 = vld [vmem:[#allocation4] sm:$0xff]  ;;  %v70_v12 = vld [vmem:[#allocation4 + $0x10] sm:$0xff]  ;;  %vm409_vm4 = vcmask 1042434   ;;  %vm412_vm5 = vcmask 1043459   ;;  %vm400_vm6 = vcmask 253952  }
  0x29   :  { %2110 = vmatprep.subr.mxu0 %v74_v3  ;;  %2125 = vmatpush3.msra.mxu1 %v2625_v4  ;;  %v2633_v9 = vld [vmem:[#allocation9] sm:$0xff]  ;;  %v69_v10 = vld [vmem:[#allocation4 + $0x8] sm:$0xff]  ;;  %v71_v13 = vld [vmem:[#allocation4 + $0x18] sm:$0xff]  ;;  %vm624_vm7 = vcmask 254977   ;;  %s2576_s22 = smov 96   ;;  %vm845_vm8 = vcmask 256002  }
  0x2a   :  { %2111 = vmatpush3.msra.mxu0 %v74_v3  ;;  %2126 = vmatprep.subr.mxu1 %v2572_v0  ;;  %v2015_v14 = vld [vmem:[%s3298_s3] ss:$0 sm:$0xff]  ;;  %s2574_s3 = smov 64   ;;  %vm1066_vm9 = vcmask 257027   ;;  %vm1288_vm10 = vcmask 258052   ;;  %vm1511_vm11 = vcmask 259077  }
  0x2b   :  { %2112 = vmatprep.subr.mxu0 %v73_v5  ;;  %2127 = vmatpush3.msra.mxu1 %v2628_v6  ;;  %vm1734_vm12 = vcmask 260102   ;;  %vm1957_vm13 = vcmask 261127   ;;  %vm1971_vm14 = vcmask 256000  }
  0x2c   :  { %2113 = vmatpush3.msra.mxu0 %v73_v5  ;;  %2128 = vmatprep.subr.mxu1 %v2572_v0 }
  0x2d   :  { %v181_v11 = vld [vmem:[#allocation2] sm:$0xf]  ;;  %2114 = vmatprep.subr.mxu0 %v72_v7  ;;  %2116 = vmatprep.mubr.msk.f32.mxu0 %vm83_vm2, %v68_v8  ;;  %v182_v34 = vld [vmem:[#allocation3] sm:$0xf] }
  0x2e   :  { %2115 = vmatpush3.msra.mxu0 %v72_v7  ;;  %2129 = vmatpush3.msra.mxu1 %v2633_v9  ;;  %v302_v37 = vrot.slane %v182_v34, 2  ;;  %v301_v38 = vrot.slane %v182_v34, 1  ;;  %v303_v39 = vrot.slane %v182_v34, 3 }
  0x2f   :  { %2117 = vmatmul.mubr.msk.f32.vlgmr.msra.gmra.mxu0 %vm83_vm2, %v69_v10  ;;  %2131 = vmatmul.mubr.msk.f32.vlgmr.msra.gmra.mxu1 %vm83_vm2, %v181_v11 }
  0x30   :  { %2119 = vmatprep.mubr.msk.f32.mxu0 %vm83_vm2, %v70_v12  ;;  %2133 = vmatprep.subr.mxu0 %v2572_v0 }
  0x31   :  { %2134 = vmatpush3.msra.mxu0 %v2622_v2  ;;  %2144 = vmatprep.subr.mxu1 %v2572_v0 }
  0x32   :  { %2135 = vmatprep.subr.mxu0 %v2572_v0  ;;  %2145 = vmatpush3.msra.mxu1 %v2622_v2 }
  0x33   :  { %2120 = vmatmul.mubr.msk.f32.gmra.mxu0 %vm83_vm2, %v71_v13  ;;  %2146 = vmatprep.subr.mxu1 %v2572_v0 }
  0x34   :  { %2136 = vmatpush3.msra.mxu0 %v2625_v4  ;;  %2141 = vmatprep.mubr.msk.f32.mxu0 %vm2573_vm1, %v2572_v0 }
  0x35   :  { %2137 = vmatprep.subr.mxu0 %v2572_v0  ;;  %2147 = vmatpush3.msra.mxu1 %v2625_v4 }
  0x36   :  { %2138 = vmatpush3.msra.mxu0 %v2628_v6  ;;  %2148 = vmatprep.subr.mxu1 %v2572_v0 }
  0x37   :  { %2139 = vmatprep.subr.mxu0 %v2572_v0  ;;  %2149 = vmatpush3.msra.mxu1 %v2628_v6 }
  0x38   :  { %2140 = vmatpush3.msra.mxu0 %v2633_v9  ;;  %2150 = vmatprep.subr.mxu1 %v2572_v0 }
  0x39   :  { %2151 = vmatpush3.msra.mxu1 %v2633_v9  ;;  %2152 = vmatprep.mubr.msk.f32.mxu1 %vm2573_vm1, %v2572_v0 }
  0x3a   :  { %2155 = vmatprep.subr.mxu0 %v2572_v0  ;;  %2166 = vmatprep.subr.mxu1 %v2572_v0 }
  0xef   :  { %v2118_v15 = vpop.f32.mrf.mxu0  ;;  %v256_v16 = vpop.f32.mrf.mxu1 }
  0xf0   :  { %v2667_v17 = vadd.f32 %v2118_v15, %v2015_v14  ;;  %v261_v18 = vrot.slane %v256_v16, 1  ;;  %v263_v24 = vrot.slane %v256_v16, 3  ;;  %v262_v28 = vrot.slane %v256_v16, 2 }
  0xf1   :  { %v162_v19 = vpop.f32.mrf.mxu0  ;;  %v2132_v20 = vpop.f32.mrf.mxu1 }
  0xf2   :  { %v269_v21 = vadd.f32 %v261_v18, %v2667_v17  ;;  %v2670_v22 = vadd.f32 %v2015_v14, %v162_v19 }
  0xf3   :  { %v2121_v23 = vpop.f32.mrf.mxu0 }
  0xf4   :  { %2221 = vtanh.f32 %v269_v21  ;;  %v2672_v25 = vadd.f32 %v2121_v23, %v2015_v14  ;;  %v268_v26 = vadd.f32 %v256_v16, %v2670_v22  ;;  %v2022_v40 = vmul.f32 -1.442695, %v269_v21 }
  0xf5   :  { %v172_v27 = vpop.f32.mrf.mxu0 }
  0xf6   :  { %v271_v29 = vadd.f32 %v263_v24, %v2672_v25  ;;  %v2676_v30 = vadd.f32 %v2015_v14, %v172_v27  ;;  %2223 = vtanh.f32 %v268_v26  ;;  %v2021_v41 = vmul.f32 -1.442695, %v268_v26 }
  0xf8   :  { %v270_v31 = vadd.f32 %v262_v28, %v2676_v30  ;;  %2225 = vtanh.f32 %v271_v29  ;;  %v2024_v43 = vmul.f32 -1.442695, %v271_v29 }
  0xfa   :  { %2227 = vtanh.f32 %v270_v31  ;;  %v2023_v42 = vmul.f32 -1.442695, %v270_v31 }
  0xfb   :  { %2229 = vpow2.f32 %v2022_v40 }
  0xfc   :  { %2231 = vpow2.f32 %v2021_v41 }
  0xfd   :  { %2233 = vpow2.f32 %v2023_v42 }
  0xfe   :  { %2235 = vpow2.f32 %v2024_v43 }
 0x101   :  { %v2222_v32 = vpop.eup %2221 }
 0x102   :  { %326 = vrot.lane.b32.xlu0 %v2222_v32, %s2574_s3 }
 0x103   :  { %v2224_v33 = vpop.eup %2223 }
 0x104   :  { %324 = vrot.lane.b32.xlu1 %v2224_v33, %s2574_s3 }
 0x105   :  { %v2226_v35 = vpop.eup %2225 }
 0x107   :  { %v2228_v36 = vpop.eup %2227 }
 0x108   :  { %330 = vrot.lane.b32.xlu1 %v2226_v35, %s2574_s3  ;;  %328 = vrot.lane.b32.xlu0 %v2228_v36, %s2574_s3  ;;  %v2230_v44 = vpop.eup %2229 }
 0x109   :  { %v285_v45 = vadd.f32 1.0, %v2230_v44  ;;  %v2232_v46 = vpop.eup %2231 }
 0x10a   :  { %v2234_v47 = vpop.eup %2233  ;;  %v284_v48 = vadd.f32 1.0, %v2232_v46 }
 0x10b   :  { %2237 = vrcp.f32 %v285_v45  ;;  %v286_v49 = vadd.f32 1.0, %v2234_v47  ;;  %v2236_v50 = vpop.eup %2235 }
 0x10c   :  { %308 = vrot.lane.b32.xlu1 %v302_v37, %s2575_s9  ;;  %306 = vrot.lane.b32.xlu0 %v301_v38, %s2575_s9  ;;  %2239 = vrcp.f32 %v284_v48  ;;  %v287_v51 = vadd.f32 1.0, %v2236_v50 }
 0x10d   :  { %2241 = vrcp.f32 %v286_v49 }
 0x10e   :  { %2243 = vrcp.f32 %v287_v51 }
 0x110   :  { %310 = vrot.lane.b32.xlu1 %v303_v39, %s2575_s9  ;;  %304 = vrot.lane.b32.xlu0 %v182_v34, %s2575_s9 }
 0x118   :  { %v2238_v52 = vpop.eup %2237 }
 0x119   :  { %v2240_v56 = vpop.eup %2239 }
 0x11a   :  { %v2242_v58 = vpop.eup %2241 }
 0x11b   :  { %v2244_v62 = vpop.eup %2243 }
 0x174   :  { %v327_v53 = vpop.permute.xlu0 %326 }
 0x175   :  { %v337_v54 = vmul.f32 %v2238_v52, %v327_v53 }
 0x176   :  { %v325_v55 = vpop.permute.xlu1 %324 }
 0x177   :  { %346 = vrot.lane.b32.xlu0 %v337_v54, %s2575_s9  ;;  %v336_v57 = vmul.f32 %v2240_v56, %v325_v55 }
 0x17a   :  { %v329_v59 = vpop.permute.xlu0 %328  ;;  %v331_v61 = vpop.permute.xlu1 %330 }
 0x17b   :  { %344 = vrot.lane.b32.xlu0 %v336_v57, %s2575_s9  ;;  %v338_v60 = vmul.f32 %v2242_v58, %v329_v59  ;;  %v339_v63 = vmul.f32 %v2244_v62, %v331_v61 }
 0x17d   :  { %348 = vrot.lane.b32.xlu1 %v338_v60, %s2575_s9 }
 0x17e   :  { %v307_v1 = vpop.permute.xlu0 %306  ;;  %v309_v5 = vpop.permute.xlu1 %308 }
 0x17f   :  { %v317_v7 = vmul.f32 %v2238_v52, %v307_v1  ;;  %v318_v15 = vmul.f32 %v2242_v58, %v309_v5 }
 0x181   :  { %350 = vrot.lane.b32.xlu1 %v339_v63, %s2575_s9 }
 0x182   :  { %v305_v3 = vpop.permute.xlu0 %304  ;;  %v311_v11 = vpop.permute.xlu1 %310 }
 0x183   :  { %v316_v12 = vmul.f32 %v2240_v56, %v305_v3  ;;  %v319_v19 = vmul.f32 %v2244_v62, %v311_v11 }
 0x1e9   :  { %v347_v8 = vpop.permute.xlu0 %346 }
 0x1ea   :  { %v2691_v10 = vadd.f32 %v347_v8, %v317_v7 }
 0x1ec   :  { %2245 = vtanh.f32 %v2691_v10 }
 0x1ed   :  { %v345_v13 = vpop.permute.xlu0 %344 }
 0x1ee   :  { %v2694_v14 = vadd.f32 %v345_v13, %v316_v12 }
 0x1ef   :  { %v349_v16 = vpop.permute.xlu1 %348 }
 0x1f0   :  { %2247 = vtanh.f32 %v2694_v14  ;;  %v2697_v18 = vadd.f32 %v349_v16, %v318_v15 }
 0x1f2   :  { %2249 = vtanh.f32 %v2697_v18 }
 0x1f3   :  { %v351_v20 = vpop.permute.xlu1 %350 }
 0x1f4   :  { %v2700_v21 = vadd.f32 %v351_v20, %v319_v19 }
 0x1f6   :  { %2251 = vtanh.f32 %v2700_v21 }
 0x1f9   :  { %v2246_v23 = vpop.eup %2245 }
 0x1fa   :  { %370 = vrot.lane.b32.xlu0 %v2246_v23, %s2574_s3 }
 0x1fd   :  { %v2248_v24 = vpop.eup %2247 }
 0x1fe   :  { %368 = vrot.lane.b32.xlu0 %v2248_v24, %s2574_s3 }
 0x1ff   :  { %v2250_v26 = vpop.eup %2249 }
 0x200   :  { %372 = vrot.lane.b32.xlu1 %v2250_v26, %s2574_s3 }
 0x203   :  { %v2252_v27 = vpop.eup %2251 }
 0x204   :  { %374 = vrot.lane.b32.xlu1 %v2252_v27, %s2574_s3 }
 0x26c   :  { %v371_v28 = vpop.permute.xlu0 %370 }
 0x26d   :  { %v2707_v32 = vmul.f32 %v2238_v52, %v371_v28 }
 0x26f   :  { %v405_v37 = vrot.slane %v2707_v32, 7 }
 0x270   :  { %v369_v29 = vpop.permute.xlu0 %368 }
 0x271   :  { %v2711_v34 = vmul.f32 %v2240_v56, %v369_v29  ;;  %v532_v29 = vrot.slane %v2694_v14, 7 }
 0x272   :  { %v373_v31 = vpop.permute.xlu1 %372 }
 0x273   :  { %v2709_v33 = vmul.f32 %v2242_v58, %v373_v31  ;;  %v407_v40 = vsel %vm406_vm3, %v405_v37, %v2711_v34  ;;  %v534_v37 = vrot.slane %v2697_v18, 7 }
 0x275   :  { %v408_v35 = vrot.slane %v2709_v33, 6 }
 0x276   :  { %v375_v36 = vpop.permute.xlu1 %374 }
 0x277   :  { %v2715_v38 = vmul.f32 %v2244_v62, %v375_v36  ;;  %v410_v41 = vsel %vm409_vm4, %v408_v35, %v407_v40  ;;  %v533_v36 = vrot.slane %v2691_v10, 7 }
 0x279   :  { %v411_v39 = vrot.slane %v2715_v38, 5 }
 0x27b   :  { %v413_v42 = vsel %vm412_vm5, %v411_v39, %v410_v41 }
 0x27c   :  { %414 = vrot.lane.b32.xlu0 %v413_v42, %s2575_s9 }
 0x2ee   :  { %v415_v43 = vpop.permute.xlu0 %414 }
 0x2ef   :  { %2142 = vmatmul.mubr.msk.f32.vlgmr.msra.gmra.mxu0 %vm83_vm2, %v415_v43 }
 0x2f0   :  { %2156 = vmatpush3.msra.mxu0 %v2622_v2  ;;  %2163 = vmatprep.mubr.msk.f32.mxu0 %vm2573_vm1, %v2572_v0 }
 0x2f1   :  { %2157 = vmatprep.subr.mxu0 %v2572_v0 }
 0x2f2   :  { %2158 = vmatpush3.msra.mxu0 %v2625_v4 }
 0x2f3   :  { %2159 = vmatprep.subr.mxu0 %v2572_v0 }
 0x2f4   :  { %2160 = vmatpush3.msra.mxu0 %v2628_v6 }
 0x2f5   :  { %2161 = vmatprep.subr.mxu0 %v2572_v0 }
 0x2f6   :  { %2162 = vmatpush3.msra.mxu0 %v2633_v9 }
 0x2f7   :  { %2177 = vmatprep.subr.mxu0 %v2572_v0 }
 0x3af   :  { %v484_v44 = vpop.f32.mrf.mxu0 }
 0x3b0   :  { %v489_v45 = vrot.slane %v484_v44, 7  ;;  %v490_v46 = vrot.slane %v484_v44, 1  ;;  %v497_v49 = vadd.f32 %v484_v44, %v2667_v17  ;;  %v491_v50 = vrot.slane %v484_v44, 2 }
 0x3b1   :  { %v2143_v47 = vpop.f32.mrf.mxu0  ;;  %v535_v44 = vrot.slane %v2700_v21, 7 }
 0x3b2   :  { %v496_v48 = vadd.f32 %v489_v45, %v2670_v22  ;;  %v498_v51 = vadd.f32 %v490_v46, %v2676_v30  ;;  %v499_v52 = vadd.f32 %v491_v50, %v2672_v25  ;;  %v2027_v58 = vmul.f32 -1.442695, %v497_v49 }
 0x3b4   :  { %2253 = vtanh.f32 %v496_v48  ;;  %v2026_v57 = vmul.f32 -1.442695, %v496_v48  ;;  %v2028_v59 = vmul.f32 -1.442695, %v498_v51  ;;  %v2029_v60 = vmul.f32 -1.442695, %v499_v52 }
 0x3b5   :  { %2255 = vtanh.f32 %v497_v49 }
 0x3b6   :  { %2257 = vtanh.f32 %v498_v51 }
 0x3b7   :  { %2259 = vtanh.f32 %v499_v52 }
 0x3b8   :  { %2261 = vpow2.f32 %v2026_v57 }
 0x3b9   :  { %2263 = vpow2.f32 %v2027_v58 }
 0x3ba   :  { %2265 = vpow2.f32 %v2028_v59 }
 0x3bb   :  { %2267 = vpow2.f32 %v2029_v60 }
 0x3c1   :  { %v2254_v53 = vpop.eup %2253 }
 0x3c2   :  { %548 = vrot.lane.b32.xlu1 %v2254_v53, %s2574_s3  ;;  %v2256_v54 = vpop.eup %2255 }
 0x3c3   :  { %v2258_v55 = vpop.eup %2257 }
 0x3c4   :  { %552 = vrot.lane.b32.xlu0 %v2258_v55, %s2574_s3  ;;  %v2260_v56 = vpop.eup %2259 }
 0x3c5   :  { %v2262_v61 = vpop.eup %2261 }
 0x3c6   :  { %550 = vrot.lane.b32.xlu1 %v2256_v54, %s2574_s3  ;;  %v2264_v62 = vpop.eup %2263  ;;  %v512_v63 = vadd.f32 1.0, %v2262_v61 }
 0x3c7   :  { %v2266_v1 = vpop.eup %2265  ;;  %v513_v3 = vadd.f32 1.0, %v2264_v62 }
 0x3c8   :  { %554 = vrot.lane.b32.xlu0 %v2260_v56, %s2574_s3  ;;  %v514_v5 = vadd.f32 1.0, %v2266_v1  ;;  %2269 = vrcp.f32 %v512_v63  ;;  %v2268_v7 = vpop.eup %2267 }
 0x3c9   :  { %2271 = vrcp.f32 %v513_v3  ;;  %v515_v8 = vadd.f32 1.0, %v2268_v7 }
 0x3ca   :  { %2273 = vrcp.f32 %v514_v5 }
 0x3cb   :  { %2275 = vrcp.f32 %v515_v8 }
 0x3d5   :  { %v2270_v11 = vpop.eup %2269 }
 0x3d6   :  { %v2272_v15 = vpop.eup %2271  ;;  %v540_v31 = vmul.f32 %v2270_v11, %v532_v29 }
 0x3d7   :  { %v2274_v16 = vpop.eup %2273  ;;  %v541_v41 = vmul.f32 %v2272_v15, %v533_v36 }
 0x3d8   :  { %v2276_v26 = vpop.eup %2275  ;;  %v542_v40 = vmul.f32 %v2274_v16, %v534_v37 }
 0x3d9   :  { %v543_v14 = vmul.f32 %v2276_v26, %v535_v44 }
 0x434   :  { %v549_v12 = vpop.permute.xlu1 %548 }
 0x435   :  { %v560_v13 = vmul.f32 %v2270_v11, %v549_v12 }
 0x436   :  { %v553_v19 = vpop.permute.xlu0 %552 }
 0x437   :  { %568 = vrot.lane.b32.xlu1 %v560_v13, %s2575_s9  ;;  %v562_v23 = vmul.f32 %v2274_v16, %v553_v19 }
 0x438   :  { %v551_v20 = vpop.permute.xlu1 %550 }
 0x439   :  { %v561_v24 = vmul.f32 %v2272_v15, %v551_v20  ;;  %572 = vrot.lane.b32.xlu0 %v562_v23, %s2575_s9 }
 0x43a   :  { %v555_v27 = vpop.permute.xlu0 %554 }
 0x43b   :  { %570 = vrot.lane.b32.xlu1 %v561_v24, %s2575_s9  ;;  %v563_v28 = vmul.f32 %v2276_v26, %v555_v27 }
 0x43d   :  { %574 = vrot.lane.b32.xlu0 %v563_v28, %s2575_s9 }
 0x4a9   :  { %v569_v35 = vpop.permute.xlu1 %568 }
 0x4aa   :  { %v2749_v39 = vadd.f32 %v569_v35, %v540_v31 }
 0x4ab   :  { %v573_v42 = vpop.permute.xlu0 %572 }
 0x4ac   :  { %2277 = vtanh.f32 %v2749_v39  ;;  %v2753_v45 = vadd.f32 %v573_v42, %v542_v40 }
 0x4ad   :  { %v571_v43 = vpop.permute.xlu1 %570 }
 0x4ae   :  { %v2755_v46 = vadd.f32 %v571_v43, %v541_v41  ;;  %2279 = vtanh.f32 %v2753_v45 }
 0x4af   :  { %v575_v10 = vpop.permute.xlu0 %574 }
 0x4b0   :  { %2281 = vtanh.f32 %v2755_v46  ;;  %v2759_v18 = vadd.f32 %v575_v10, %v543_v14 }
 0x4b2   :  { %2283 = vtanh.f32 %v2759_v18 }
 0x4b9   :  { %v2278_v47 = vpop.eup %2277 }
 0x4ba   :  { %592 = vrot.lane.b32.xlu1 %v2278_v47, %s2574_s3 }
 0x4bb   :  { %v2280_v48 = vpop.eup %2279 }
 0x4bc   :  { %596 = vrot.lane.b32.xlu0 %v2280_v48, %s2574_s3 }
 0x4bd   :  { %v2282_v49 = vpop.eup %2281 }
 0x4be   :  { %594 = vrot.lane.b32.xlu1 %v2282_v49, %s2574_s3 }
 0x4bf   :  { %v2284_v21 = vpop.eup %2283 }
 0x4c0   :  { %598 = vrot.lane.b32.xlu0 %v2284_v21, %s2574_s3 }
 0x52c   :  { %v593_v50 = vpop.permute.xlu1 %592 }
 0x52d   :  { %v2766_v51 = vmul.f32 %v2270_v11, %v593_v50 }
 0x52e   :  { %v597_v52 = vpop.permute.xlu0 %596 }
 0x52f   :  { %v2768_v53 = vmul.f32 %v2274_v16, %v597_v52  ;;  %v629_v55 = vrot.slane %v2766_v51, 1 }
 0x530   :  { %v595_v54 = vpop.permute.xlu1 %594 }
 0x531   :  { %v2771_v56 = vmul.f32 %v2272_v15, %v595_v54  ;;  %v631_v57 = vrot.slane %v2768_v53, 7 }
 0x532   :  { %v599_v58 = vpop.permute.xlu0 %598 }
 0x533   :  { %v630_v59 = vsel %vm406_vm3, %v2771_v56, %v629_v55  ;;  %v2776_v60 = vmul.f32 %v2276_v26, %v599_v58  ;;  %v753_v58 = vrot.slane %v2749_v39, 7 }
 0x534   :  { %v632_v61 = vsel %vm409_vm4, %v631_v57, %v630_v59 }
 0x535   :  { %v633_v62 = vrot.slane %v2776_v60, 6 }
 0x537   :  { %v634_v63 = vsel %vm412_vm5, %v633_v62, %v632_v61  ;;  %v754_v62 = vrot.slane %v2755_v46, 7 }
 0x538   :  { %635 = vrot.lane.b32.xlu1 %v634_v63, %s2575_s9 }
 0x5aa   :  { %v636_v1 = vpop.permute.xlu1 %635 }
 0x5ab   :  { %2153 = vmatmul.mubr.msk.f32.vlgmr.msra.gmra.mxu1 %vm83_vm2, %v636_v1  ;;  %v756_v1 = vrot.slane %v2759_v18, 7 }
 0x5ac   :  { %2167 = vmatpush3.msra.mxu1 %v2622_v2  ;;  %2174 = vmatprep.mubr.msk.f32.mxu1 %vm2573_vm1, %v2572_v0 }
 0x5ad   :  { %2168 = vmatprep.subr.mxu1 %v2572_v0 }
 0x5ae   :  { %2169 = vmatpush3.msra.mxu1 %v2625_v4 }
 0x5af   :  { %2170 = vmatprep.subr.mxu1 %v2572_v0 }
 0x5b0   :  { %2171 = vmatpush3.msra.mxu1 %v2628_v6 }
 0x5b1   :  { %2172 = vmatprep.subr.mxu1 %v2572_v0 }
 0x5b2   :  { %2173 = vmatpush3.msra.mxu1 %v2633_v9 }
 0x5b3   :  { %2188 = vmatprep.subr.mxu1 %v2572_v0 }
 0x66b   :  { %v705_v3 = vpop.f32.mrf.mxu1 }
 0x66c   :  { %v710_v5 = vrot.slane %v705_v3, 6  ;;  %v711_v7 = vrot.slane %v705_v3, 7  ;;  %v712_v11 = vrot.slane %v705_v3, 1  ;;  %v719_v16 = vadd.f32 %v705_v3, %v2676_v30 }
 0x66d   :  { %v2154_v8 = vpop.f32.mrf.mxu1 }
 0x66e   :  { %v717_v12 = vadd.f32 %v710_v5, %v2670_v22  ;;  %v718_v13 = vadd.f32 %v711_v7, %v2667_v17  ;;  %v720_v15 = vadd.f32 %v712_v11, %v2672_v25  ;;  %v2033_v29 = vmul.f32 -1.442695, %v719_v16 }
 0x66f   :  { %v755_v8 = vrot.slane %v2753_v45, 7 }
 0x670   :  { %2285 = vtanh.f32 %v717_v12  ;;  %v2031_v26 = vmul.f32 -1.442695, %v717_v12  ;;  %v2032_v27 = vmul.f32 -1.442695, %v718_v13  ;;  %v2034_v28 = vmul.f32 -1.442695, %v720_v15 }
 0x671   :  { %2287 = vtanh.f32 %v718_v13 }
 0x672   :  { %2289 = vtanh.f32 %v720_v15 }
 0x673   :  { %2291 = vtanh.f32 %v719_v16 }
 0x674   :  { %2293 = vpow2.f32 %v2031_v26 }
 0x675   :  { %2295 = vpow2.f32 %v2032_v27 }
 0x676   :  { %2297 = vpow2.f32 %v2034_v28 }
 0x677   :  { %2299 = vpow2.f32 %v2033_v29 }
 0x67d   :  { %v2286_v19 = vpop.eup %2285 }
 0x67e   :  { %769 = vrot.lane.b32.xlu0 %v2286_v19, %s2574_s3  ;;  %v2288_v20 = vpop.eup %2287 }
 0x67f   :  { %v2290_v23 = vpop.eup %2289  ;;  %771 = vrot.lane.b32.xlu1 %v2288_v20, %s2574_s3 }
 0x680   :  { %v2292_v24 = vpop.eup %2291 }
 0x681   :  { %v2294_v31 = vpop.eup %2293 }
 0x682   :  { %775 = vrot.lane.b32.xlu0 %v2290_v23, %s2574_s3  ;;  %v733_v35 = vadd.f32 1.0, %v2294_v31  ;;  %v2296_v36 = vpop.eup %2295 }
 0x683   :  { %773 = vrot.lane.b32.xlu1 %v2292_v24, %s2574_s3  ;;  %v2298_v37 = vpop.eup %2297  ;;  %v734_v40 = vadd.f32 1.0, %v2296_v36 }
 0x684   :  { %2301 = vrcp.f32 %v733_v35  ;;  %v2300_v41 = vpop.eup %2299  ;;  %v736_v42 = vadd.f32 1.0, %v2298_v37 }
 0x685   :  { %v735_v43 = vadd.f32 1.0, %v2300_v41  ;;  %2303 = vrcp.f32 %v734_v40 }
 0x686   :  { %2305 = vrcp.f32 %v736_v42 }
 0x687   :  { %2307 = vrcp.f32 %v735_v43 }
 0x691   :  { %v2302_v44 = vpop.eup %2301 }
 0x692   :  { %v2304_v47 = vpop.eup %2303  ;;  %v761_v59 = vmul.f32 %v2302_v44, %v753_v58 }
 0x693   :  { %v2306_v49 = vpop.eup %2305  ;;  %v762_v3 = vmul.f32 %v2304_v47, %v754_v62 }
 0x694   :  { %v2308_v54 = vpop.eup %2307  ;;  %v764_v7 = vmul.f32 %v2306_v49, %v756_v1 }
 0x695   :  { %v763_v39 = vmul.f32 %v2308_v54, %v755_v8 }
 0x6f0   :  { %v770_v14 = vpop.permute.xlu0 %769 }
 0x6f1   :  { %v781_v10 = vmul.f32 %v2302_v44, %v770_v14  ;;  %v772_v48 = vpop.permute.xlu1 %771 }
 0x6f2   :  { %v782_v21 = vmul.f32 %v2304_v47, %v772_v48 }
 0x6f3   :  { %789 = vrot.lane.b32.xlu0 %v781_v10, %s2575_s9 }
 0x6f4   :  { %v776_v50 = vpop.permute.xlu0 %775  ;;  %791 = vrot.lane.b32.xlu1 %v782_v21, %s2575_s9 }
 0x6f5   :  { %v784_v52 = vmul.f32 %v2306_v49, %v776_v50  ;;  %v774_v55 = vpop.permute.xlu1 %773 }
 0x6f6   :  { %v783_v57 = vmul.f32 %v2308_v54, %v774_v55 }
 0x6f7   :  { %795 = vrot.lane.b32.xlu0 %v784_v52, %s2575_s9 }
 0x6f8   :  { %793 = vrot.lane.b32.xlu1 %v783_v57, %s2575_s9 }
 0x765   :  { %v790_v61 = vpop.permute.xlu0 %789 }
 0x766   :  { %v2807_v63 = vadd.f32 %v790_v61, %v761_v59  ;;  %v792_v5 = vpop.permute.xlu1 %791 }
 0x767   :  { %v2812_v11 = vadd.f32 %v792_v5, %v762_v3 }
 0x768   :  { %2309 = vtanh.f32 %v2807_v63 }
 0x769   :  { %v796_v12 = vpop.permute.xlu0 %795  ;;  %2311 = vtanh.f32 %v2812_v11 }
 0x76a   :  { %v2814_v13 = vadd.f32 %v796_v12, %v764_v7  ;;  %v794_v46 = vpop.permute.xlu1 %793 }
 0x76b   :  { %v2818_v15 = vadd.f32 %v794_v46, %v763_v39 }
 0x76c   :  { %2313 = vtanh.f32 %v2814_v13 }
 0x76d   :  { %2315 = vtanh.f32 %v2818_v15 }
 0x775   :  { %v2310_v18 = vpop.eup %2309 }
 0x776   :  { %813 = vrot.lane.b32.xlu0 %v2310_v18, %s2574_s3  ;;  %v2312_v16 = vpop.eup %2311 }
 0x777   :  { %815 = vrot.lane.b32.xlu1 %v2312_v16, %s2574_s3 }
 0x779   :  { %v2314_v45 = vpop.eup %2313 }
 0x77a   :  { %819 = vrot.lane.b32.xlu0 %v2314_v45, %s2574_s3  ;;  %v2316_v19 = vpop.eup %2315 }
 0x77b   :  { %817 = vrot.lane.b32.xlu1 %v2316_v19, %s2574_s3 }
 0x7e8   :  { %v814_v20 = vpop.permute.xlu0 %813 }
 0x7e9   :  { %v2825_v23 = vmul.f32 %v2302_v44, %v814_v20  ;;  %v816_v24 = vpop.permute.xlu1 %815 }
 0x7ea   :  { %v2827_v26 = vmul.f32 %v2304_v47, %v816_v24 }
 0x7eb   :  { %v850_v27 = vrot.slane %v2825_v23, 2 }
 0x7ec   :  { %v820_v28 = vpop.permute.xlu0 %819  ;;  %v851_v31 = vrot.slane %v2827_v26, 1 }
 0x7ed   :  { %v2830_v29 = vmul.f32 %v2306_v49, %v820_v28  ;;  %v818_v35 = vpop.permute.xlu1 %817 }
 0x7ee   :  { %v2834_v37 = vmul.f32 %v2308_v54, %v818_v35  ;;  %v852_v40 = vsel %vm406_vm3, %v851_v31, %v850_v27 }
 0x7ef   :  { %v854_v36 = vrot.slane %v2830_v29, 7 }
 0x7f0   :  { %v853_v41 = vsel %vm409_vm4, %v2834_v37, %v852_v40 }
 0x7f1   :  { %v855_v42 = vsel %vm412_vm5, %v854_v36, %v853_v41 }
 0x7f2   :  { %856 = vrot.lane.b32.xlu0 %v855_v42, %s2575_s9  ;;  %v974_v42 = vrot.slane %v2807_v63, 7 }
 0x864   :  { %v857_v43 = vpop.permute.xlu0 %856 }
 0x865   :  { %2164 = vmatmul.mubr.msk.f32.vlgmr.msra.gmra.mxu0 %vm83_vm2, %v857_v43 }
 0x866   :  { %2178 = vmatpush3.msra.mxu0 %v2622_v2  ;;  %2185 = vmatprep.mubr.msk.f32.mxu0 %vm2573_vm1, %v2572_v0 }
 0x867   :  { %2179 = vmatprep.subr.mxu0 %v2572_v0 }
 0x868   :  { %2180 = vmatpush3.msra.mxu0 %v2625_v4 }
 0x869   :  { %2181 = vmatprep.subr.mxu0 %v2572_v0 }
 0x86a   :  { %2182 = vmatpush3.msra.mxu0 %v2628_v6 }
 0x86b   :  { %2183 = vmatprep.subr.mxu0 %v2572_v0 }
 0x86c   :  { %2184 = vmatpush3.msra.mxu0 %v2633_v9 }
 0x86d   :  { %2199 = vmatprep.subr.mxu0 %v2572_v0 }
 0x925   :  { %v926_v44 = vpop.f32.mrf.mxu0 }
 0x926   :  { %v931_v14 = vrot.slane %v926_v44, 5  ;;  %v932_v10 = vrot.slane %v926_v44, 6  ;;  %v933_v48 = vrot.slane %v926_v44, 7  ;;  %v941_v52 = vadd.f32 %v926_v44, %v2672_v25 }
 0x927   :  { %v2165_v47 = vpop.f32.mrf.mxu0 }
 0x928   :  { %v938_v49 = vadd.f32 %v931_v14, %v2670_v22  ;;  %v939_v21 = vadd.f32 %v932_v10, %v2667_v17  ;;  %v940_v50 = vadd.f32 %v933_v48, %v2676_v30  ;;  %v2039_v1 = vmul.f32 -1.442695, %v941_v52 }
 0x929   :  { %v975_v14 = vrot.slane %v2812_v11, 7  ;;  %v976_v47 = vrot.slane %v2818_v15, 7 }
 0x92a   :  { %2317 = vtanh.f32 %v938_v49  ;;  %v2036_v59 = vmul.f32 -1.442695, %v938_v49  ;;  %v2037_v61 = vmul.f32 -1.442695, %v939_v21  ;;  %v2038_v62 = vmul.f32 -1.442695, %v940_v50 }
 0x92b   :  { %2319 = vtanh.f32 %v939_v21 }
 0x92c   :  { %2321 = vtanh.f32 %v940_v50  ;;  %v977_v50 = vrot.slane %v2814_v13, 7 }
 0x92d   :  { %2323 = vtanh.f32 %v941_v52 }
 0x92e   :  { %2325 = vpow2.f32 %v2036_v59 }
 0x92f   :  { %2327 = vpow2.f32 %v2037_v61 }
 0x930   :  { %2329 = vpow2.f32 %v2038_v62 }
 0x931   :  { %2331 = vpow2.f32 %v2039_v1 }
 0x937   :  { %v2318_v54 = vpop.eup %2317 }
 0x938   :  { %990 = vrot.lane.b32.xlu1 %v2318_v54, %s2574_s3  ;;  %v2320_v55 = vpop.eup %2319 }
 0x939   :  { %v2322_v57 = vpop.eup %2321  ;;  %992 = vrot.lane.b32.xlu0 %v2320_v55, %s2574_s3 }
 0x93a   :  { %v2324_v58 = vpop.eup %2323 }
 0x93b   :  { %v2326_v3 = vpop.eup %2325 }
 0x93c   :  { %994 = vrot.lane.b32.xlu1 %v2322_v57, %s2574_s3  ;;  %v954_v5 = vadd.f32 1.0, %v2326_v3  ;;  %v2328_v7 = vpop.eup %2327 }
 0x93d   :  { %996 = vrot.lane.b32.xlu0 %v2324_v58, %s2574_s3  ;;  %v2330_v8 = vpop.eup %2329  ;;  %v955_v12 = vadd.f32 1.0, %v2328_v7 }
 0x93e   :  { %2333 = vrcp.f32 %v954_v5  ;;  %v2332_v39 = vpop.eup %2331  ;;  %v956_v46 = vadd.f32 1.0, %v2330_v8 }
 0x93f   :  { %v957_v18 = vadd.f32 1.0, %v2332_v39  ;;  %2335 = vrcp.f32 %v955_v12 }
 0x940   :  { %2337 = vrcp.f32 %v956_v46 }
 0x941   :  { %2339 = vrcp.f32 %v957_v18 }
 0x94b   :  { %v2334_v16 = vpop.eup %2333 }
 0x94c   :  { %v2336_v20 = vpop.eup %2335  ;;  %v982_v43 = vmul.f32 %v2334_v16, %v974_v42 }
 0x94d   :  { %v2338_v27 = vpop.eup %2337  ;;  %v983_v48 = vmul.f32 %v2336_v20, %v975_v14 }
 0x94e   :  { %v2340_v36 = vpop.eup %2339  ;;  %v984_v21 = vmul.f32 %v2338_v27, %v976_v47 }
 0x94f   :  { %v985_v63 = vmul.f32 %v2340_v36, %v977_v50 }
 0x9aa   :  { %v991_v45 = vpop.permute.xlu1 %990 }
 0x9ab   :  { %v1002_v19 = vmul.f32 %v2334_v16, %v991_v45  ;;  %v993_v24 = vpop.permute.xlu0 %992 }
 0x9ac   :  { %v1003_v28 = vmul.f32 %v2336_v20, %v993_v24 }
 0x9ad   :  { %1010 = vrot.lane.b32.xlu1 %v1002_v19, %s2575_s9 }
 0x9ae   :  { %v995_v31 = vpop.permute.xlu1 %994  ;;  %1012 = vrot.lane.b32.xlu0 %v1003_v28, %s2575_s9 }
 0x9af   :  { %v1004_v35 = vmul.f32 %v2338_v27, %v995_v31  ;;  %v997_v40 = vpop.permute.xlu0 %996 }
 0x9b0   :  { %v1005_v41 = vmul.f32 %v2340_v36, %v997_v40 }
 0x9b1   :  { %1014 = vrot.lane.b32.xlu1 %v1004_v35, %s2575_s9 }
 0x9b2   :  { %1016 = vrot.lane.b32.xlu0 %v1005_v41, %s2575_s9 }
 0xa1f   :  { %v1011_v44 = vpop.permute.xlu1 %1010 }
 0xa20   :  { %v2866_v10 = vadd.f32 %v1011_v44, %v982_v43  ;;  %v1013_v49 = vpop.permute.xlu0 %1012 }
 0xa21   :  { %v2871_v52 = vadd.f32 %v1013_v49, %v983_v48 }
 0xa22   :  { %2341 = vtanh.f32 %v2866_v10 }
 0xa23   :  { %v1015_v54 = vpop.permute.xlu1 %1014  ;;  %2343 = vtanh.f32 %v2871_v52 }
 0xa24   :  { %v2873_v55 = vadd.f32 %v1015_v54, %v984_v21  ;;  %v1017_v11 = vpop.permute.xlu0 %1016 }
 0xa25   :  { %v2877_v57 = vadd.f32 %v1017_v11, %v985_v63 }
 0xa26   :  { %2345 = vtanh.f32 %v2873_v55 }
 0xa27   :  { %2347 = vtanh.f32 %v2877_v57 }
 0xa2f   :  { %v2342_v15 = vpop.eup %2341 }
 0xa30   :  { %1034 = vrot.lane.b32.xlu1 %v2342_v15, %s2574_s3  ;;  %v2344_v58 = vpop.eup %2343 }
 0xa31   :  { %1036 = vrot.lane.b32.xlu0 %v2344_v58, %s2574_s3 }
 0xa33   :  { %v2346_v13 = vpop.eup %2345 }
 0xa34   :  { %1038 = vrot.lane.b32.xlu1 %v2346_v13, %s2574_s3  ;;  %v2348_v59 = vpop.eup %2347 }
 0xa35   :  { %1040 = vrot.lane.b32.xlu0 %v2348_v59, %s2574_s3 }
 0xaa2   :  { %v1035_v61 = vpop.permute.xlu1 %1034 }
 0xaa3   :  { %v2884_v62 = vmul.f32 %v2334_v16, %v1035_v61  ;;  %v1037_v1 = vpop.permute.xlu0 %1036 }
 0xaa4   :  { %v2886_v3 = vmul.f32 %v2336_v20, %v1037_v1 }
 0xaa5   :  { %v1071_v5 = vrot.slane %v2884_v62, 3 }
 0xaa6   :  { %v1039_v7 = vpop.permute.xlu1 %1038  ;;  %v1072_v12 = vrot.slane %v2886_v3, 2 }
 0xaa7   :  { %v2889_v8 = vmul.f32 %v2338_v27, %v1039_v7  ;;  %v1041_v39 = vpop.permute.xlu0 %1040 }
 0xaa8   :  { %v2893_v18 = vmul.f32 %v2340_v36, %v1041_v39  ;;  %v1073_v45 = vsel %vm406_vm3, %v1072_v12, %v1071_v5 }
 0xaa9   :  { %v1074_v46 = vrot.slane %v2889_v8, 1 }
 0xaab   :  { %v1075_v16 = vsel %vm409_vm4, %v1074_v46, %v1073_v45 }
 0xaac   :  { %v1076_v19 = vsel %vm412_vm5, %v2893_v18, %v1075_v16 }
 0xaad   :  { %1077 = vrot.lane.b32.xlu1 %v1076_v19, %s2575_s9 }
 0xb1f   :  { %v1078_v20 = vpop.permute.xlu1 %1077 }
 0xb20   :  { %2175 = vmatmul.mubr.msk.f32.vlgmr.msra.gmra.mxu1 %vm83_vm2, %v1078_v20  ;;  %v1196_v20 = vrot.slane %v2866_v10, 7 }
 0xb21   :  { %2189 = vmatpush3.msra.mxu1 %v2622_v2  ;;  %2196 = vmatprep.mubr.msk.f32.mxu1 %vm2573_vm1, %v2572_v0 }
 0xb22   :  { %2190 = vmatprep.subr.mxu1 %v2572_v0 }
 0xb23   :  { %2191 = vmatpush3.msra.mxu1 %v2625_v4 }
 0xb24   :  { %2192 = vmatprep.subr.mxu1 %v2572_v0 }
 0xb25   :  { %2193 = vmatpush3.msra.mxu1 %v2628_v6 }
 0xb26   :  { %2194 = vmatprep.subr.mxu1 %v2572_v0 }
 0xb27   :  { %2195 = vmatpush3.msra.mxu1 %v2633_v9 }
 0xbe0   :  { %v1147_v24 = vpop.f32.mrf.mxu1 }
 0xbe1   :  { %v1152_v27 = vrot.slane %v1147_v24, 4  ;;  %v1153_v28 = vrot.slane %v1147_v24, 5  ;;  %v1154_v2 = vrot.slane %v1147_v24, 6  ;;  %v1155_v40 = vrot.slane %v1147_v24, 7 }
 0xbe2   :  { %v2176_v31 = vpop.f32.mrf.mxu1  ;;  %v1197_v24 = vrot.slane %v2871_v52, 7 }
 0xbe3   :  { %v1160_v35 = vadd.f32 %v1152_v27, %v2670_v22  ;;  %v1161_v36 = vadd.f32 %v1153_v28, %v2667_v17  ;;  %v1162_v4 = vadd.f32 %v1154_v2, %v2676_v30  ;;  %v1163_v6 = vadd.f32 %v1155_v40, %v2672_v25 }
 0xbe4   :  { %v1198_v40 = vrot.slane %v2873_v55, 7 }
 0xbe5   :  { %2349 = vtanh.f32 %v1160_v35  ;;  %v2041_v44 = vmul.f32 -1.442695, %v1160_v35  ;;  %v2042_v14 = vmul.f32 -1.442695, %v1161_v36  ;;  %v2043_v47 = vmul.f32 -1.442695, %v1162_v4 }
 0xbe6   :  { %2351 = vtanh.f32 %v1161_v36  ;;  %v2044_v48 = vmul.f32 -1.442695, %v1163_v6 }
 0xbe7   :  { %2353 = vtanh.f32 %v1162_v4  ;;  %v1199_v4 = vrot.slane %v2877_v57, 7 }
 0xbe8   :  { %2355 = vtanh.f32 %v1163_v6 }
 0xbe9   :  { %2357 = vpow2.f32 %v2041_v44 }
 0xbea   :  { %2359 = vpow2.f32 %v2042_v14 }
 0xbeb   :  { %2361 = vpow2.f32 %v2043_v47 }
 0xbec   :  { %2363 = vpow2.f32 %v2044_v48 }
 0xbf2   :  { %v2350_v41 = vpop.eup %2349 }
 0xbf3   :  { %v2352_v9 = vpop.eup %2351  ;;  %1212 = vrot.lane.b32.xlu0 %v2350_v41, %s2574_s3 }
 0xbf4   :  { %1214 = vrot.lane.b32.xlu1 %v2352_v9, %s2574_s3  ;;  %v2354_v42 = vpop.eup %2353 }
 0xbf5   :  { %v2356_v43 = vpop.eup %2355 }
 0xbf6   :  { %v2358_v49 = vpop.eup %2357 }
 0xbf7   :  { %1216 = vrot.lane.b32.xlu0 %v2354_v42, %s2574_s3  ;;  %v2360_v21 = vpop.eup %2359  ;;  %v1176_v50 = vadd.f32 1.0, %v2358_v49 }
 0xbf8   :  { %1218 = vrot.lane.b32.xlu1 %v2356_v43, %s2574_s3  ;;  %v1177_v54 = vadd.f32 1.0, %v2360_v21  ;;  %v2362_v63 = vpop.eup %2361 }
 0xbf9   :  { %v2364_v11 = vpop.eup %2363  ;;  %2365 = vrcp.f32 %v1176_v50  ;;  %v1178_v15 = vadd.f32 1.0, %v2362_v63 }
 0xbfa   :  { %2367 = vrcp.f32 %v1177_v54  ;;  %v1179_v58 = vadd.f32 1.0, %v2364_v11 }
 0xbfb   :  { %2369 = vrcp.f32 %v1178_v15 }
 0xbfc   :  { %2371 = vrcp.f32 %v1179_v58 }
 0xc06   :  { %v2366_v13 = vpop.eup %2365 }
 0xc07   :  { %v2368_v61 = vpop.eup %2367  ;;  %v1204_v27 = vmul.f32 %v2366_v13, %v1196_v20 }
 0xc08   :  { %v2370_v12 = vpop.eup %2369  ;;  %v1205_v28 = vmul.f32 %v2368_v61, %v1197_v24 }
 0xc09   :  { %v2372_v46 = vpop.eup %2371  ;;  %v1206_v6 = vmul.f32 %v2370_v12, %v1198_v40 }
 0xc0a   :  { %v1207_v10 = vmul.f32 %v2372_v46, %v1199_v4 }
 0xc65   :  { %v1213_v59 = vpop.permute.xlu0 %1212 }
 0xc66   :  { %v1215_v1 = vpop.permute.xlu1 %1214  ;;  %v1224_v5 = vmul.f32 %v2366_v13, %v1213_v59 }
 0xc67   :  { %v1225_v7 = vmul.f32 %v2368_v61, %v1215_v1 }
 0xc68   :  { %1232 = vrot.lane.b32.xlu0 %v1224_v5, %s2575_s9 }
 0xc69   :  { %1234 = vrot.lane.b32.xlu1 %v1225_v7, %s2575_s9  ;;  %v1217_v39 = vpop.permute.xlu0 %1216  ;;  %v2477_v7 = vld [vmem:[#allocation9 + $0x18] sm:$0xff] }
 0xc6a   :  { %v1219_v45 = vpop.permute.xlu1 %1218  ;;  %v1226_v16 = vmul.f32 %v2370_v12, %v1217_v39  ;;  %v2479_v39 = vld [vmem:[#allocation9 + $0x8] sm:$0xff] }
 0xc6b   :  { %v1227_v19 = vmul.f32 %v2372_v46, %v1219_v45 }
 0xc6c   :  { %1236 = vrot.lane.b32.xlu0 %v1226_v16, %s2575_s9 }
 0xc6d   :  { %1238 = vrot.lane.b32.xlu1 %v1227_v19, %s2575_s9 }
 0xcda   :  { %v1233_v31 = vpop.permute.xlu0 %1232 }
 0xcdb   :  { %v1235_v2 = vpop.permute.xlu1 %1234  ;;  %v2924_v35 = vadd.f32 %v1233_v31, %v1204_v27 }
 0xcdc   :  { %v2926_v36 = vadd.f32 %v1235_v2, %v1205_v28 }
 0xcdd   :  { %2373 = vtanh.f32 %v2924_v35 }
 0xcde   :  { %2375 = vtanh.f32 %v2926_v36  ;;  %v1237_v41 = vpop.permute.xlu0 %1236 }
 0xcdf   :  { %v1239_v52 = vpop.permute.xlu1 %1238  ;;  %v2932_v9 = vadd.f32 %v1237_v41, %v1206_v6 }
 0xce0   :  { %v2934_v42 = vadd.f32 %v1239_v52, %v1207_v10 }
 0xce1   :  { %2377 = vtanh.f32 %v2932_v9 }
 0xce2   :  { %2379 = vtanh.f32 %v2934_v42 }
 0xcea   :  { %v2374_v43 = vpop.eup %2373 }
 0xceb   :  { %v2376_v55 = vpop.eup %2375  ;;  %1256 = vrot.lane.b32.xlu0 %v2374_v43, %s2574_s3 }
 0xcec   :  { %1258 = vrot.lane.b32.xlu1 %v2376_v55, %s2574_s3 }
 0xcee   :  { %v2378_v57 = vpop.eup %2377 }
 0xcef   :  { %v2380_v44 = vpop.eup %2379  ;;  %1260 = vrot.lane.b32.xlu0 %v2378_v57, %s2574_s3 }
 0xcf0   :  { %1262 = vrot.lane.b32.xlu1 %v2380_v44, %s2574_s3 }
 0xd5d   :  { %v1257_v14 = vpop.permute.xlu0 %1256 }
 0xd5e   :  { %v1259_v47 = vpop.permute.xlu1 %1258  ;;  %v2944_v49 = vmul.f32 %v2366_v13, %v1257_v14 }
 0xd5f   :  { %v2942_v48 = vmul.f32 %v2368_v61, %v1259_v47 }
 0xd60   :  { %v1293_v50 = vrot.slane %v2944_v49, 4 }
 0xd61   :  { %v1294_v21 = vrot.slane %v2942_v48, 3  ;;  %v1261_v54 = vpop.permute.xlu0 %1260 }
 0xd62   :  { %v1263_v63 = vpop.permute.xlu1 %1262  ;;  %v2948_v11 = vmul.f32 %v2370_v12, %v1261_v54  ;;  %v2478_v12 = vld [vmem:[#allocation9 + $0x10] sm:$0xff] }
 0xd63   :  { %v2950_v15 = vmul.f32 %v2372_v46, %v1263_v63  ;;  %v1295_v1 = vsel %vm406_vm3, %v1294_v21, %v1293_v50  ;;  %v2480_v46 = vld [vmem:[#allocation9] sm:$0xff] }
 0xd64   :  { %v1296_v58 = vrot.slane %v2948_v11, 2 }
 0xd65   :  { %v1298_v59 = vrot.slane %v2950_v15, 1 }
 0xd66   :  { %v1297_v61 = vsel %vm409_vm4, %v1296_v58, %v1295_v1 }
 0xd67   :  { %v1299_v13 = vsel %vm412_vm5, %v1298_v59, %v1297_v61 }
 0xd68   :  { %1300 = vrot.lane.b32.xlu0 %v1299_v13, %s2575_s9 }
 0xdda   :  { %v1301_v5 = vpop.permute.xlu0 %1300 }
 0xddb   :  { %2186 = vmatmul.mubr.msk.f32.vlgmr.msra.gmra.mxu0 %vm83_vm2, %v1301_v5 }
 0xddc   :  { %2200 = vmatpush3.msra.mxu0 %v2477_v7  ;;  %2207 = vmatprep.mubr.msk.f32.mxu0 %vm2573_vm1, %v2572_v0 }
 0xddd   :  { %2201 = vmatprep.subr.mxu0 %v2572_v0 }
 0xdde   :  { %2202 = vmatpush3.msra.mxu0 %v2478_v12 }
 0xddf   :  { %2203 = vmatprep.subr.mxu0 %v2572_v0 }
 0xde0   :  { %2204 = vmatpush3.msra.mxu0 %v2479_v39 }
 0xde1   :  { %2205 = vmatprep.subr.mxu0 %v2572_v0 }
 0xde2   :  { %2206 = vmatpush3.msra.mxu0 %v2480_v46 }
 0xe9b   :  { %v1370_v45 = vpop.f32.mrf.mxu0 }
 0xe9c   :  { %v1375_v16 = vrot.slane %v1370_v45, 3  ;;  %v1376_v19 = vrot.slane %v1370_v45, 4  ;;  %v1377_v24 = vrot.slane %v1370_v45, 5  ;;  %v1378_v31 = vrot.slane %v1370_v45, 6 }
 0xe9d   :  { %v2187_v20 = vpop.f32.mrf.mxu0 }
 0xe9e   :  { %v1383_v27 = vadd.f32 %v1375_v16, %v2670_v22  ;;  %v1384_v28 = vadd.f32 %v1376_v19, %v2667_v17  ;;  %v1385_v2 = vadd.f32 %v1377_v24, %v2676_v30  ;;  %v1386_v40 = vadd.f32 %v1378_v31, %v2672_v25 }
 0xe9f   :  { %v1419_v19 = vrot.slane %v2924_v35, 7  ;;  %v1420_v20 = vrot.slane %v2926_v36, 7 }
 0xea0   :  { %2381 = vtanh.f32 %v1383_v27  ;;  %v2046_v41 = vmul.f32 -1.442695, %v1383_v27  ;;  %v2047_v52 = vmul.f32 -1.442695, %v1384_v28  ;;  %v2048_v43 = vmul.f32 -1.442695, %v1385_v2 }
 0xea1   :  { %2383 = vtanh.f32 %v1384_v28  ;;  %v2049_v55 = vmul.f32 -1.442695, %v1386_v40 }
 0xea2   :  { %2385 = vtanh.f32 %v1385_v2 }
 0xea3   :  { %2387 = vtanh.f32 %v1386_v40 }
 0xea4   :  { %2389 = vpow2.f32 %v2046_v41 }
 0xea5   :  { %2391 = vpow2.f32 %v2047_v52 }
 0xea6   :  { %2393 = vpow2.f32 %v2048_v43 }
 0xea7   :  { %2395 = vpow2.f32 %v2049_v55 }
 0xead   :  { %v2382_v0 = vpop.eup %2381 }
 0xeae   :  { %v2384_v4 = vpop.eup %2383  ;;  %1435 = vrot.lane.b32.xlu1 %v2382_v0, %s2574_s3  ;;  %v1421_v0 = vrot.slane %v2932_v9, 7 }
 0xeaf   :  { %1437 = vrot.lane.b32.xlu0 %v2384_v4, %s2574_s3  ;;  %v2386_v6 = vpop.eup %2385  ;;  %v1422_v4 = vrot.slane %v2934_v42, 7 }
 0xeb0   :  { %v2388_v10 = vpop.eup %2387 }
 0xeb1   :  { %v2390_v57 = vpop.eup %2389 }
 0xeb2   :  { %1439 = vrot.lane.b32.xlu1 %v2386_v6, %s2574_s3  ;;  %v2392_v44 = vpop.eup %2391  ;;  %v1399_v14 = vadd.f32 1.0, %v2390_v57 }
 0xeb3   :  { %1441 = vrot.lane.b32.xlu0 %v2388_v10, %s2574_s3  ;;  %v1400_v47 = vadd.f32 1.0, %v2392_v44  ;;  %v2394_v21 = vpop.eup %2393 }
 0xeb4   :  { %v2396_v50 = vpop.eup %2395  ;;  %2397 = vrcp.f32 %v1399_v14  ;;  %v1401_v54 = vadd.f32 1.0, %v2394_v21 }
 0xeb5   :  { %2399 = vrcp.f32 %v1400_v47  ;;  %v1402_v63 = vadd.f32 1.0, %v2396_v50 }
 0xeb6   :  { %2401 = vrcp.f32 %v1401_v54 }
 0xeb7   :  { %2403 = vrcp.f32 %v1402_v63 }
 0xec1   :  { %v2398_v58 = vpop.eup %2397 }
 0xec2   :  { %v2400_v1 = vpop.eup %2399  ;;  %v1427_v24 = vmul.f32 %v2398_v58, %v1419_v19 }
 0xec3   :  { %v2402_v7 = vpop.eup %2401  ;;  %v1428_v27 = vmul.f32 %v2400_v1, %v1420_v20 }
 0xec4   :  { %v2404_v39 = vpop.eup %2403  ;;  %v1429_v6 = vmul.f32 %v2402_v7, %v1421_v0 }
 0xec5   :  { %v1430_v35 = vmul.f32 %v2404_v39, %v1422_v4 }
 0xf20   :  { %v1436_v59 = vpop.permute.xlu1 %1435 }
 0xf21   :  { %v1438_v61 = vpop.permute.xlu0 %1437  ;;  %v1447_v13 = vmul.f32 %v2398_v58, %v1436_v59 }
 0xf22   :  { %v1448_v5 = vmul.f32 %v2400_v1, %v1438_v61 }
 0xf23   :  { %1455 = vrot.lane.b32.xlu1 %v1447_v13, %s2575_s9 }
 0xf24   :  { %1457 = vrot.lane.b32.xlu0 %v1448_v5, %s2575_s9  ;;  %v1440_v12 = vpop.permute.xlu1 %1439 }
 0xf25   :  { %v1442_v46 = vpop.permute.xlu0 %1441  ;;  %v1449_v45 = vmul.f32 %v2402_v7, %v1440_v12 }
 0xf26   :  { %v1450_v16 = vmul.f32 %v2404_v39, %v1442_v46 }
 0xf27   :  { %1459 = vrot.lane.b32.xlu1 %v1449_v45, %s2575_s9 }
 0xf28   :  { %1461 = vrot.lane.b32.xlu0 %v1450_v16, %s2575_s9 }
 0xf95   :  { %v1456_v28 = vpop.permute.xlu1 %1455 }
 0xf96   :  { %v1458_v31 = vpop.permute.xlu0 %1457  ;;  %v2978_v2 = vadd.f32 %v1456_v28, %v1427_v24 }
 0xf97   :  { %v2980_v40 = vadd.f32 %v1458_v31, %v1428_v27 }
 0xf98   :  { %2405 = vtanh.f32 %v2978_v2 }
 0xf99   :  { %2407 = vtanh.f32 %v2980_v40  ;;  %v1460_v10 = vpop.permute.xlu1 %1459 }
 0xf9a   :  { %v1462_v36 = vpop.permute.xlu0 %1461  ;;  %v2986_v41 = vadd.f32 %v1460_v10, %v1429_v6 }
 0xf9b   :  { %v2988_v52 = vadd.f32 %v1462_v36, %v1430_v35 }
 0xf9c   :  { %2409 = vtanh.f32 %v2986_v41 }
 0xf9d   :  { %2411 = vtanh.f32 %v2988_v52 }
 0xfa5   :  { %v2406_v43 = vpop.eup %2405 }
 0xfa6   :  { %v2408_v9 = vpop.eup %2407  ;;  %1479 = vrot.lane.b32.xlu1 %v2406_v43, %s2574_s3 }
 0xfa7   :  { %1481 = vrot.lane.b32.xlu0 %v2408_v9, %s2574_s3 }
 0xfa9   :  { %v2410_v42 = vpop.eup %2409 }
 0xfaa   :  { %v2412_v55 = vpop.eup %2411  ;;  %1483 = vrot.lane.b32.xlu1 %v2410_v42, %s2574_s3 }
 0xfab   :  { %1485 = vrot.lane.b32.xlu0 %v2412_v55, %s2574_s3 }
0x1018   :  { %v1480_v57 = vpop.permute.xlu1 %1479 }
0x1019   :  { %v1482_v44 = vpop.permute.xlu0 %1481  ;;  %v2998_v47 = vmul.f32 %v2398_v58, %v1480_v57 }
0x101a   :  { %v2996_v14 = vmul.f32 %v2400_v1, %v1482_v44 }
0x101b   :  { %v1516_v50 = vrot.slane %v2998_v47, 5 }
0x101c   :  { %v1517_v21 = vrot.slane %v2996_v14, 4  ;;  %v1484_v54 = vpop.permute.xlu1 %1483 }
0x101d   :  { %v1486_v63 = vpop.permute.xlu0 %1485  ;;  %v3002_v59 = vmul.f32 %v2402_v7, %v1484_v54 }
0x101e   :  { %v3004_v61 = vmul.f32 %v2404_v39, %v1486_v63  ;;  %v1518_v12 = vsel %vm406_vm3, %v1517_v21, %v1516_v50 }
0x101f   :  { %v1519_v13 = vrot.slane %v3002_v59, 3 }
0x1020   :  { %v1521_v5 = vrot.slane %v3004_v61, 2 }
0x1021   :  { %v1520_v1 = vsel %vm409_vm4, %v1519_v13, %v1518_v12 }
0x1022   :  { %v1522_v58 = vsel %vm412_vm5, %v1521_v5, %v1520_v1 }
0x1023   :  { %1523 = vrot.lane.b32.xlu1 %v1522_v58, %s2575_s9 }
0x1095   :  { %v1524_v46 = vpop.permute.xlu1 %1523 }
0x1096   :  { %2197 = vmatmul.mubr.msk.f32.vlgmr.msra.gmra.mxu1 %vm83_vm2, %v1524_v46 }
0x1156   :  { %v1593_v45 = vpop.f32.mrf.mxu1 }
0x1157   :  { %v1598_v7 = vrot.slane %v1593_v45, 2  ;;  %v1599_v16 = vrot.slane %v1593_v45, 3  ;;  %v1600_v19 = vrot.slane %v1593_v45, 4  ;;  %v1601_v27 = vrot.slane %v1593_v45, 5 }
0x1158   :  { %v2198_v39 = vpop.f32.mrf.mxu1 }
0x1159   :  { %v1606_v20 = vadd.f32 %v1598_v7, %v2670_v22  ;;  %v1607_v24 = vadd.f32 %v1599_v16, %v2667_v17  ;;  %v1608_v28 = vadd.f32 %v1600_v19, %v2676_v30  ;;  %v1609_v31 = vadd.f32 %v1601_v27, %v2672_v25 }
0x115a   :  { %v1643_v27 = vrot.slane %v2980_v40, 7 }
0x115b   :  { %2413 = vtanh.f32 %v1606_v20  ;;  %v2051_v10 = vmul.f32 -1.442695, %v1606_v20  ;;  %v2052_v36 = vmul.f32 -1.442695, %v1607_v24  ;;  %v2053_v43 = vmul.f32 -1.442695, %v1608_v28 }
0x115c   :  { %2415 = vtanh.f32 %v1607_v24  ;;  %v2054_v9 = vmul.f32 -1.442695, %v1609_v31  ;;  %v1642_v24 = vrot.slane %v2978_v2, 7 }
0x115d   :  { %2417 = vtanh.f32 %v1608_v28 }
0x115e   :  { %2419 = vtanh.f32 %v1609_v31 }
0x115f   :  { %2421 = vpow2.f32 %v2051_v10  ;;  %v1644_v10 = vrot.slane %v2986_v41, 7 }
0x1160   :  { %2423 = vpow2.f32 %v2052_v36  ;;  %v1645_v36 = vrot.slane %v2988_v52, 7 }
0x1161   :  { %2425 = vpow2.f32 %v2053_v43 }
0x1162   :  { %2427 = vpow2.f32 %v2054_v9 }
0x1168   :  { %v2414_v0 = vpop.eup %2413 }
0x1169   :  { %v2416_v4 = vpop.eup %2415  ;;  %1658 = vrot.lane.b32.xlu0 %v2414_v0, %s2574_s3 }
0x116a   :  { %1660 = vrot.lane.b32.xlu1 %v2416_v4, %s2574_s3  ;;  %v2418_v6 = vpop.eup %2417 }
0x116b   :  { %v2420_v35 = vpop.eup %2419 }
0x116c   :  { %v2422_v42 = vpop.eup %2421 }
0x116d   :  { %1662 = vrot.lane.b32.xlu0 %v2418_v6, %s2574_s3  ;;  %v2424_v55 = vpop.eup %2423  ;;  %v1622_v57 = vadd.f32 1.0, %v2422_v42 }
0x116e   :  { %1664 = vrot.lane.b32.xlu1 %v2420_v35, %s2574_s3  ;;  %v1623_v44 = vadd.f32 1.0, %v2424_v55  ;;  %v2426_v21 = vpop.eup %2425 }
0x116f   :  { %v2428_v50 = vpop.eup %2427  ;;  %2429 = vrcp.f32 %v1622_v57  ;;  %v1624_v54 = vadd.f32 1.0, %v2426_v21 }
0x1170   :  { %2431 = vrcp.f32 %v1623_v44  ;;  %v1625_v63 = vadd.f32 1.0, %v2428_v50 }
0x1171   :  { %2433 = vrcp.f32 %v1624_v54 }
0x1172   :  { %2435 = vrcp.f32 %v1625_v63 }
0x117c   :  { %v2430_v13 = vpop.eup %2429 }
0x117d   :  { %v2432_v12 = vpop.eup %2431  ;;  %v1650_v28 = vmul.f32 %v2430_v13, %v1642_v24 }
0x117e   :  { %v2434_v45 = vpop.eup %2433  ;;  %v1651_v31 = vmul.f32 %v2432_v12, %v1643_v27 }
0x117f   :  { %v2436_v16 = vpop.eup %2435  ;;  %v1652_v43 = vmul.f32 %v2434_v45, %v1644_v10 }
0x1180   :  { %v1653_v2 = vmul.f32 %v2436_v16, %v1645_v36 }
0x11db   :  { %v1659_v5 = vpop.permute.xlu0 %1658 }
0x11dc   :  { %v1661_v1 = vpop.permute.xlu1 %1660  ;;  %v1670_v58 = vmul.f32 %v2430_v13, %v1659_v5 }
0x11dd   :  { %v1671_v46 = vmul.f32 %v2432_v12, %v1661_v1 }
0x11de   :  { %1678 = vrot.lane.b32.xlu0 %v1670_v58, %s2575_s9 }
0x11df   :  { %1680 = vrot.lane.b32.xlu1 %v1671_v46, %s2575_s9  ;;  %v1663_v7 = vpop.permute.xlu0 %1662 }
0x11e0   :  { %v1665_v39 = vpop.permute.xlu1 %1664  ;;  %v1672_v19 = vmul.f32 %v2434_v45, %v1663_v7 }
0x11e1   :  { %v1673_v20 = vmul.f32 %v2436_v16, %v1665_v39 }
0x11e2   :  { %1682 = vrot.lane.b32.xlu0 %v1672_v19, %s2575_s9 }
0x11e3   :  { %1684 = vrot.lane.b32.xlu1 %v1673_v20, %s2575_s9 }
0x1250   :  { %v1679_v0 = vpop.permute.xlu0 %1678 }
0x1251   :  { %v1681_v4 = vpop.permute.xlu1 %1680  ;;  %v3027_v6 = vadd.f32 %v1679_v0, %v1650_v28 }
0x1252   :  { %v3029_v35 = vadd.f32 %v1681_v4, %v1651_v31 }
0x1253   :  { %2437 = vtanh.f32 %v3027_v6 }
0x1254   :  { %2439 = vtanh.f32 %v3029_v35  ;;  %v1683_v9 = vpop.permute.xlu0 %1682 }
0x1255   :  { %v1685_v40 = vpop.permute.xlu1 %1684  ;;  %v3035_v42 = vadd.f32 %v1683_v9, %v1652_v43 }
0x1256   :  { %v3037_v55 = vadd.f32 %v1685_v40, %v1653_v2 }
0x1257   :  { %2441 = vtanh.f32 %v3035_v42 }
0x1258   :  { %2443 = vtanh.f32 %v3037_v55 }
0x1260   :  { %v2438_v57 = vpop.eup %2437 }
0x1261   :  { %v2440_v41 = vpop.eup %2439  ;;  %1702 = vrot.lane.b32.xlu0 %v2438_v57, %s2574_s3 }
0x1262   :  { %1704 = vrot.lane.b32.xlu1 %v2440_v41, %s2574_s3 }
0x1264   :  { %v2442_v52 = vpop.eup %2441 }
0x1265   :  { %v2444_v44 = vpop.eup %2443  ;;  %1706 = vrot.lane.b32.xlu0 %v2442_v52, %s2574_s3 }
0x1266   :  { %1708 = vrot.lane.b32.xlu1 %v2444_v44, %s2574_s3 }
0x12d3   :  { %v1703_v21 = vpop.permute.xlu0 %1702 }
0x12d4   :  { %v1705_v50 = vpop.permute.xlu1 %1704  ;;  %v3047_v63 = vmul.f32 %v2430_v13, %v1703_v21 }
0x12d5   :  { %v3045_v54 = vmul.f32 %v2432_v12, %v1705_v50 }
0x12d6   :  { %v1739_v1 = vrot.slane %v3047_v63, 6 }
0x12d7   :  { %v1740_v5 = vrot.slane %v3045_v54, 5  ;;  %v1707_v58 = vpop.permute.xlu0 %1706 }
0x12d8   :  { %v1709_v46 = vpop.permute.xlu1 %1708  ;;  %v3051_v7 = vmul.f32 %v2434_v45, %v1707_v58 }
0x12d9   :  { %v3053_v39 = vmul.f32 %v2436_v16, %v1709_v46  ;;  %v1741_v24 = vsel %vm406_vm3, %v1740_v5, %v1739_v1 }
0x12da   :  { %v1742_v19 = vrot.slane %v3051_v7, 4 }
0x12db   :  { %v1744_v20 = vrot.slane %v3053_v39, 3 }
0x12dc   :  { %v1743_v12 = vsel %vm409_vm4, %v1742_v19, %v1741_v24 }
0x12dd   :  { %v1745_v13 = vsel %vm412_vm5, %v1744_v20, %v1743_v12 }
0x12de   :  { %1746 = vrot.lane.b32.xlu0 %v1745_v13, %s2575_s9 }
0x1350   :  { %v1747_v27 = vpop.permute.xlu0 %1746 }
0x1351   :  { %2208 = vmatmul.mubr.msk.f32.vlgmr.msra.gmra.mxu0 %vm83_vm2, %v1747_v27 }
0x1411   :  { %v1816_v28 = vpop.f32.mrf.mxu0 }
0x1412   :  { %v1822_v45 = vrot.slane %v1816_v28, 2  ;;  %v1823_v16 = vrot.slane %v1816_v28, 3  ;;  %v1824_v4 = vrot.slane %v1816_v28, 4  ;;  %v1821_v10 = vrot.slane %v1816_v28, 1 }
0x1413   :  { %v2209_v31 = vpop.f32.mrf.mxu0 }
0x1414   :  { %v1830_v0 = vadd.f32 %v1822_v45, %v2667_v17  ;;  %v1831_v36 = vadd.f32 %v1823_v16, %v2676_v30  ;;  %v1832_v43 = vadd.f32 %v1824_v4, %v2672_v25  ;;  %v1829_v2 = vadd.f32 %v1821_v10, %v2670_v22 }
0x1415   :  { %v1866_v10 = vrot.slane %v3029_v35, 7 }
0x1416   :  { %2445 = vtanh.f32 %v1830_v0  ;;  %v2057_v30 = vmul.f32 -1.442695, %v1830_v0  ;;  %v2058_v25 = vmul.f32 -1.442695, %v1831_v36  ;;  %v2059_v41 = vmul.f32 -1.442695, %v1832_v43 }
0x1417   :  { %2447 = vtanh.f32 %v1831_v36  ;;  %v2056_v22 = vmul.f32 -1.442695, %v1829_v2 }
0x1418   :  { %2449 = vtanh.f32 %v1832_v43 }
0x1419   :  { %2451 = vtanh.f32 %v1829_v2 }
0x141a   :  { %2453 = vpow2.f32 %v2057_v30 }
0x141b   :  { %2455 = vpow2.f32 %v2058_v25 }
0x141c   :  { %2457 = vpow2.f32 %v2059_v41 }
0x141d   :  { %2459 = vpow2.f32 %v2056_v22 }
0x1423   :  { %v2446_v9 = vpop.eup %2445 }
0x1424   :  { %1883 = vrot.lane.b32.xlu1 %v2446_v9, %s2574_s3  ;;  %v2448_v40 = vpop.eup %2447  ;;  %v1867_v9 = vrot.slane %v3035_v42, 7 }
0x1425   :  { %v2450_v57 = vpop.eup %2449  ;;  %1885 = vrot.lane.b32.xlu0 %v2448_v40, %s2574_s3  ;;  %v1868_v40 = vrot.slane %v3037_v55, 7 }
0x1426   :  { %v2452_v17 = vpop.eup %2451 }
0x1427   :  { %v2454_v52 = vpop.eup %2453 }
0x1428   :  { %1887 = vrot.lane.b32.xlu1 %v2450_v57, %s2574_s3  ;;  %v1846_v44 = vadd.f32 1.0, %v2454_v52  ;;  %v2456_v21 = vpop.eup %2455 }
0x1429   :  { %1881 = vrot.lane.b32.xlu0 %v2452_v17, %s2574_s3  ;;  %v2458_v50 = vpop.eup %2457  ;;  %v1847_v5 = vadd.f32 1.0, %v2456_v21 }
0x142a   :  { %2461 = vrcp.f32 %v1846_v44  ;;  %v2460_v1 = vpop.eup %2459  ;;  %v1848_v58 = vadd.f32 1.0, %v2458_v50 }
0x142b   :  { %v1845_v46 = vadd.f32 1.0, %v2460_v1  ;;  %2463 = vrcp.f32 %v1847_v5 }
0x142c   :  { %2465 = vrcp.f32 %v1848_v58 }
0x142d   :  { %2467 = vrcp.f32 %v1845_v46 }
0x1437   :  { %v3070_v19 = vpop.eup %2461 }
0x1438   :  { %v3074_v12 = vpop.eup %2463  ;;  %v1874_v36 = vmul.f32 %v3070_v19, %v1866_v10 }
0x1439   :  { %v3076_v27 = vpop.eup %2465  ;;  %v1875_v57 = vmul.f32 %v3074_v12, %v1867_v9 }
0x143a   :  { %v3081_v16 = vpop.eup %2467  ;;  %v1876_v17 = vmul.f32 %v3076_v27, %v1868_v40 }
0x1496   :  { %v1884_v20 = vpop.permute.xlu1 %1883 }
0x1497   :  { %v1894_v24 = vmul.f32 %v3070_v19, %v1884_v20  ;;  %v1886_v13 = vpop.permute.xlu0 %1885 }
0x1498   :  { %v1895_v28 = vmul.f32 %v3074_v12, %v1886_v13 }
0x1499   :  { %1903 = vrot.lane.b32.xlu1 %v1894_v24, %s2575_s9 }
0x149a   :  { %v1888_v45 = vpop.permute.xlu1 %1887  ;;  %1905 = vrot.lane.b32.xlu0 %v1895_v28, %s2575_s9 }
0x149b   :  { %v1896_v31 = vmul.f32 %v3076_v27, %v1888_v45  ;;  %v1882_v0 = vpop.permute.xlu0 %1881 }
0x149c   :  { %v1893_v4 = vmul.f32 %v3081_v16, %v1882_v0 }
0x149d   :  { %1907 = vrot.lane.b32.xlu1 %v1896_v31, %s2575_s9 }
0x149e   :  { %1901 = vrot.lane.b32.xlu0 %v1893_v4, %s2575_s9 }
0x14a1   :  { %388 = vrot.lane.b32.xlu1 %v2711_v34, %s2575_s9 }
0x14a2   :  { %390 = vrot.lane.b32.xlu0 %v2707_v32, %s2575_s9  ;;  %v1865_v32 = vrot.slane %v3027_v6, 7 }
0x14a4   :  { %v1873_v22 = vmul.f32 %v3081_v16, %v1865_v32 }
0x14a5   :  { %392 = vrot.lane.b32.xlu1 %v2709_v33, %s2575_s9 }
0x150b   :  { %v1904_v43 = vpop.permute.xlu1 %1903 }
0x150c   :  { %v1914_v2 = vadd.f32 %v1904_v43, %v1874_v36  ;;  %v1906_v34 = vpop.permute.xlu0 %1905 }
0x150d   :  { %v1915_v33 = vadd.f32 %v1906_v34, %v1875_v57 }
0x150e   :  { %2469 = vtanh.f32 %v1914_v2  ;;  %v1977_v30 = vrot.slane %v1914_v2, 7 }
0x150f   :  { %v1908_v25 = vpop.permute.xlu1 %1907  ;;  %2471 = vtanh.f32 %v1915_v33  ;;  %v1978_v41 = vrot.slane %v1915_v33, 6 }
0x1510   :  { %v1916_v35 = vadd.f32 %v1908_v25, %v1876_v17  ;;  %v1902_v55 = vpop.permute.xlu0 %1901 }
0x1511   :  { %v3100_v52 = vadd.f32 %v1902_v55, %v1873_v22  ;;  %v1979_v21 = vsel %vm406_vm3, %v1978_v41, %v1977_v30 }
0x1512   :  { %2473 = vtanh.f32 %v1916_v35  ;;  %v1980_v42 = vrot.slane %v1916_v35, 5 }
0x1513   :  { %v389_v44 = vpop.permute.xlu1 %388  ;;  %2475 = vtanh.f32 %v3100_v52 }
0x1514   :  { %401 = vst.msk [vmem:[%s3299_s4] sm:$0x1] %vm400_vm6, %v389_v44  ;;  %v3108_v6 = vsel %vm409_vm4, %v1980_v42, %v1979_v21  ;;  %v391_v50 = vpop.permute.xlu0 %390 }
0x1515   :  { %402 = vst.msk [vmem:[%s3299_s4 + $0x8] sm:$0x1] %vm400_vm6, %v391_v50 }
0x1517   :  { %v393_v5 = vpop.permute.xlu1 %392 }
0x1518   :  { %403 = vst.msk [vmem:[%s3299_s4 + $0x10] sm:$0x1] %vm400_vm6, %v393_v5 }
0x151b   :  { %v2470_v1 = vpop.eup %2469 }
0x151c   :  { %1927 = vrot.lane.b32.xlu1 %v2470_v1, %s2574_s3  ;;  %v2472_v58 = vpop.eup %2471 }
0x151d   :  { %1929 = vrot.lane.b32.xlu0 %v2472_v58, %s2574_s3 }
0x151f   :  { %v2474_v46 = vpop.eup %2473 }
0x1520   :  { %1931 = vrot.lane.b32.xlu1 %v2474_v46, %s2574_s3  ;;  %v2476_v20 = vpop.eup %2475 }
0x1521   :  { %1925 = vrot.lane.b32.xlu0 %v2476_v20, %s2574_s3 }
0x1524   :  { %612 = vrot.lane.b32.xlu1 %v2766_v51, %s2575_s9 }
0x1525   :  { %394 = vrot.lane.b32.xlu0 %v2715_v38, %s2575_s9 }
0x1528   :  { %616 = vrot.lane.b32.xlu1 %v2768_v53, %s2575_s9 }
0x1529   :  { %614 = vrot.lane.b32.xlu0 %v2771_v56, %s2575_s9 }
0x152c   :  { %833 = vrot.lane.b32.xlu1 %v2825_v23, %s2575_s9 }
0x152d   :  { %618 = vrot.lane.b32.xlu0 %v2776_v60, %s2575_s9 }
0x1530   :  { %837 = vrot.lane.b32.xlu1 %v2834_v37, %s2575_s9 }
0x1531   :  { %835 = vrot.lane.b32.xlu0 %v2827_v26, %s2575_s9 }
0x1534   :  { %1054 = vrot.lane.b32.xlu1 %v2884_v62, %s2575_s9 }
0x1535   :  { %839 = vrot.lane.b32.xlu0 %v2830_v29, %s2575_s9 }
0x1538   :  { %1058 = vrot.lane.b32.xlu1 %v2889_v8, %s2575_s9 }
0x1539   :  { %1056 = vrot.lane.b32.xlu0 %v2886_v3, %s2575_s9 }
0x153c   :  { %1276 = vrot.lane.b32.xlu1 %v2944_v49, %s2575_s9 }
0x153d   :  { %1060 = vrot.lane.b32.xlu0 %v2893_v18, %s2575_s9 }
0x1540   :  { %1280 = vrot.lane.b32.xlu1 %v2948_v11, %s2575_s9 }
0x1541   :  { %1278 = vrot.lane.b32.xlu0 %v2942_v48, %s2575_s9 }
0x1544   :  { %1499 = vrot.lane.b32.xlu1 %v2998_v47, %s2575_s9 }
0x1545   :  { %1282 = vrot.lane.b32.xlu0 %v2950_v15, %s2575_s9 }
0x1548   :  { %1503 = vrot.lane.b32.xlu1 %v3002_v59, %s2575_s9 }
0x1549   :  { %1501 = vrot.lane.b32.xlu0 %v2996_v14, %s2575_s9 }
0x154c   :  { %1722 = vrot.lane.b32.xlu1 %v3047_v63, %s2575_s9 }
0x154d   :  { %1505 = vrot.lane.b32.xlu0 %v3004_v61, %s2575_s9 }
0x1550   :  { %1726 = vrot.lane.b32.xlu1 %v3051_v7, %s2575_s9 }
0x1551   :  { %1724 = vrot.lane.b32.xlu0 %v3045_v54, %s2575_s9 }
0x1555   :  { %1728 = vrot.lane.b32.xlu0 %v3053_v39, %s2575_s9 }
0x158e   :  { %v1928_v38 = vpop.permute.xlu1 %1927 }
0x158f   :  { %v1938_v51 = vmul.f32 %v3070_v19, %v1928_v38  ;;  %v1930_v53 = vpop.permute.xlu0 %1929 }
0x1590   :  { %v1939_v60 = vmul.f32 %v3074_v12, %v1930_v53 }
0x1591   :  { %v1962_v56 = vrot.slane %v1938_v51, 7 }
0x1592   :  { %v1932_v23 = vpop.permute.xlu1 %1931  ;;  %v1963_v29 = vrot.slane %v1939_v60, 6  ;;  %1949 = vrot.lane.b32.xlu0 %v1939_v60, %s2575_s9 }
0x1593   :  { %v1940_v26 = vmul.f32 %v3076_v27, %v1932_v23  ;;  %v1926_v62 = vpop.permute.xlu0 %1925 }
0x1594   :  { %v1937_v3 = vmul.f32 %v3081_v16, %v1926_v62  ;;  %v1964_v18 = vsel %vm406_vm3, %v1963_v29, %v1962_v56 }
0x1595   :  { %v1965_v37 = vrot.slane %v1940_v26, 5 }
0x1596   :  { %v613_v8 = vpop.permute.xlu1 %612  ;;  %1945 = vrot.lane.b32.xlu1 %v1937_v3, %s2575_s9 }
0x1597   :  { %625 = vst.msk [vmem:[%s3299_s4] sm:$0x2] %vm624_vm7, %v613_v8  ;;  %v1966_v48 = vsel %vm409_vm4, %v1965_v37, %v1964_v18  ;;  %v395_v49 = vpop.permute.xlu0 %394 }
0x1598   :  { %1967 = vrot.lane.b32.xlu0 %v1966_v48, %s2575_s9  ;;  %404 = vst.msk [vmem:[%s3299_s4 + $0x18] sm:$0x1] %vm400_vm6, %v395_v49 }
0x159a   :  { %v617_v11 = vpop.permute.xlu1 %616  ;;  %1947 = vrot.lane.b32.xlu1 %v1938_v51, %s2575_s9 }
0x159b   :  { %627 = vst.msk [vmem:[%s3299_s4 + $0x10] sm:$0x2] %vm624_vm7, %v617_v11  ;;  %v615_v15 = vpop.permute.xlu0 %614 }
0x159c   :  { %1982 = vrot.lane.b32.xlu0 %v3100_v52, %s2576_s22  ;;  %626 = vst.msk [vmem:[%s3299_s4 + $0x8] sm:$0x2] %vm624_vm7, %v615_v15 }
0x159e   :  { %v834_v14 = vpop.permute.xlu1 %833  ;;  %1951 = vrot.lane.b32.xlu1 %v1940_v26, %s2575_s9  ;;  %s2577_s9 = smov [#allocation10]  }
0x159f   :  { %846 = vst.msk [vmem:[%s3299_s4] sm:$0x4] %vm845_vm8, %v834_v14  ;;  %v619_v47 = vpop.permute.xlu0 %618  ;;  %s2003_s10 = sshll.u32 %s2577_s9, 4  ;;  %s2004_s10 = int_to_ptr.vmem [resolvable:$true] %s2003_s10 }
0x15a0   :  { %628 = vst.msk [vmem:[%s3299_s4 + $0x18] sm:$0x2] %vm624_vm7, %v619_v47  ;;  %s2541_s15 = scalar_lea.vmem %s2004_s10, 64  ;;  %p2546_p2 = scmp.lt.s32.totalorder %s2004_s10, %s2004_s10 }
0x15a1   :  { %p2542_p1 = scmp.ne.s32.totalorder %s2004_s10, %s2541_s15  ;;  %p2547_p3 = scmp.lt.s32.totalorder %s2541_s15, %s2541_s15 }
0x15a2   :  { %v838_v59 = vpop.permute.xlu1 %837  ;;  %1984 = vrot.lane.b32.xlu1 %v3108_v6, %s2576_s22 }
0x15a3   :  { %848 = vst.msk [vmem:[%s3299_s4 + $0x10] sm:$0x4] %vm845_vm8, %v838_v59  ;;  %v836_v61 = vpop.permute.xlu0 %835  ;;  %p2548_p4 = por %p2547_p3, %p2546_p2 }
0x15a4   :  { %847 = vst.msk [vmem:[%s3299_s4 + $0x8] sm:$0x4] %vm845_vm8, %v836_v61 }
0x15a5   :  { %p2549_p5 = pnand %p2548_p4, %p2542_p1 }
0x15a6   :  { %v1055_v54 = vpop.permute.xlu1 %1054 }
0x15a7   :  { %1067 = vst.msk [vmem:[%s3299_s4] sm:$0x8] %vm1066_vm9, %v1055_v54  ;;  %v840_v63 = vpop.permute.xlu0 %839 }
0x15a8   :  { %849 = vst.msk [vmem:[%s3299_s4 + $0x18] sm:$0x4] %vm845_vm8, %v840_v63 }
0x15aa   :  { %v1059_v7 = vpop.permute.xlu1 %1058 }
0x15ab   :  { %1069 = vst.msk [vmem:[%s3299_s4 + $0x10] sm:$0x8] %vm1066_vm9, %v1059_v7  ;;  %v1057_v39 = vpop.permute.xlu0 %1056 }
0x15ac   :  { %1068 = vst.msk [vmem:[%s3299_s4 + $0x8] sm:$0x8] %vm1066_vm9, %v1057_v39 }
0x15ae   :  { %v1277_v19 = vpop.permute.xlu1 %1276 }
0x15af   :  { %1289 = vst.msk [vmem:[%s3299_s4] sm:$0x10] %vm1288_vm10, %v1277_v19  ;;  %v1061_v24 = vpop.permute.xlu0 %1060 }
0x15b0   :  { %1070 = vst.msk [vmem:[%s3299_s4 + $0x18] sm:$0x8] %vm1066_vm9, %v1061_v24 }
0x15b2   :  { %v1281_v12 = vpop.permute.xlu1 %1280 }
0x15b3   :  { %1291 = vst.msk [vmem:[%s3299_s4 + $0x10] sm:$0x10] %vm1288_vm10, %v1281_v12  ;;  %v1279_v13 = vpop.permute.xlu0 %1278 }
0x15b4   :  { %1290 = vst.msk [vmem:[%s3299_s4 + $0x8] sm:$0x10] %vm1288_vm10, %v1279_v13 }
0x15b6   :  { %v1500_v27 = vpop.permute.xlu1 %1499 }
0x15b7   :  { %1512 = vst.msk [vmem:[%s3299_s4] sm:$0x20] %vm1511_vm11, %v1500_v27  ;;  %v1283_v28 = vpop.permute.xlu0 %1282 }
0x15b8   :  { %1292 = vst.msk [vmem:[%s3299_s4 + $0x18] sm:$0x10] %vm1288_vm10, %v1283_v28 }
0x15ba   :  { %v1504_v45 = vpop.permute.xlu1 %1503 }
0x15bb   :  { %1514 = vst.msk [vmem:[%s3299_s4 + $0x10] sm:$0x20] %vm1511_vm11, %v1504_v45  ;;  %v1502_v31 = vpop.permute.xlu0 %1501 }
0x15bc   :  { %1513 = vst.msk [vmem:[%s3299_s4 + $0x8] sm:$0x20] %vm1511_vm11, %v1502_v31 }
0x15be   :  { %v1723_v16 = vpop.permute.xlu1 %1722 }
0x15bf   :  { %1735 = vst.msk [vmem:[%s3299_s4] sm:$0x40] %vm1734_vm12, %v1723_v16  ;;  %v1506_v0 = vpop.permute.xlu0 %1505 }
0x15c0   :  { %1515 = vst.msk [vmem:[%s3299_s4 + $0x18] sm:$0x20] %vm1511_vm11, %v1506_v0 }
0x15c2   :  { %v1727_v4 = vpop.permute.xlu1 %1726 }
0x15c3   :  { %1737 = vst.msk [vmem:[%s3299_s4 + $0x10] sm:$0x40] %vm1734_vm12, %v1727_v4  ;;  %v1725_v10 = vpop.permute.xlu0 %1724 }
0x15c4   :  { %1736 = vst.msk [vmem:[%s3299_s4 + $0x8] sm:$0x40] %vm1734_vm12, %v1725_v10 }
0x15c7   :  { %v1729_v36 = vpop.permute.xlu0 %1728 }
0x15c8   :  { %1738 = vst.msk [vmem:[%s3299_s4 + $0x18] sm:$0x40] %vm1734_vm12, %v1729_v36 }
0x1604   :  { %v1950_v43 = vpop.permute.xlu0 %1949 }
0x1605   :  { %1960 = vst.msk [vmem:[%s3299_s4 + $0x10] sm:$0x80] %vm1957_vm13, %v1950_v43 }
0x1608   :  { %v1946_v2 = vpop.permute.xlu1 %1945 }
0x1609   :  { %1958 = vst.msk [vmem:[%s3299_s4] sm:$0x80] %vm1957_vm13, %v1946_v2  ;;  %1970 = vst.msk [vmem:[#allocation2 - $0x7] sm:$0x80] %vm1957_vm13, %v1946_v2 }
0x160a   :  { %v1968_v9 = vpop.permute.xlu0 %1967  ;;  %1993 = vst.msk [vmem:[#allocation10 - $0x7] sm:$0x80] %vm1957_vm13, %v1946_v2 }
0x160b   :  { %1972 = vst.msk [vmem:[#allocation2 + $0x1] sm:$0x7] %vm1971_vm14, %v1968_v9  ;;  %1994 = vst.msk [vmem:[#allocation10 + $0x1] sm:$0x7] %vm1971_vm14, %v1968_v9 }
0x160c   :  { %2552 = shalt.err (!%p2549_p5)
}
0x160d   :  { %2006 = dma.vmem_to_hbm [thread:$0]  %s2004_s10, 64, %s3300_s5, [#allocation6]   ;;  %v1948_v40 = vpop.permute.xlu1 %1947 }
0x160e   :  { %v1983_v57 = vpop.permute.xlu0 %1982  ;;  %1959 = vst.msk [vmem:[%s3299_s4 + $0x8] sm:$0x80] %vm1957_vm13, %v1948_v40 }
0x160f   :  { %1988 = vst.msk [vmem:[#allocation3 - $0x7] sm:$0x80] %vm1957_vm13, %v1983_v57 }
0x1611   :  { %v1952_v34 = vpop.permute.xlu1 %1951 }
0x1612   :  { %1961 = vst.msk [vmem:[%s3299_s4 + $0x18] sm:$0x80] %vm1957_vm13, %v1952_v34 }
0x1615   :  { %v1985_v17 = vpop.permute.xlu1 %1984 }
0x1616   :  { %1989 = vst.msk [vmem:[#allocation3 + $0x1] sm:$0x7] %vm1971_vm14, %v1985_v17 }
0x1617   :  { %2565 = dma.done.wait [#allocation6], 64  }
0x1618   :  { %2566 = vsyncadd [#allocation6], 4294967232 }
0x1619   :  { %2012 = vsyncpa [#allocation5], 1 }
0x161a   :  { %2013 = vsyncpa [#allocation8], 1 }
0x161b   :  { %2014 = vsyncpa [#allocation6], 1 }

</bundles_post_ra>
